<compile_context>
chip_gen: v6e
topology: v6e:2x2x1
jax: 0.10.0
libtpu: 0.0.40
codegen_flags: <defaults>
</compile_context>

<pallas_src>
import functools

import jax
import jax.numpy as jnp
from jax.experimental import pallas as pl
from jax.experimental.pallas import tpu as pltpu


# --------------------------------- kernel ------------------------------------

def _dcrnn_cell_kernel(x_ref, h_ref, s0_ref, s1_ref,
                       wux_u_ref, wuh_u_ref, wux_r_ref, wuh_r_ref,
                       wcx_ref, wch_ref, bu_u_ref, bu_r_ref, bc_ref,
                       out_ref, *, num_nodes, hidden_dim, max_step):
    N, H, K = num_nodes, hidden_dim, max_step
    K1 = K + 1
    f32 = jnp.float32

    x = x_ref[...]                          # (N, Dp)  padded input features, this batch
    h = h_ref[...]                          # (N, H)   hidden state, this batch
    supports = (s0_ref[...], s1_ref[...])   # (N, N)   dense random-walk supports

    # ---- diffusion chains: chunk c = support_idx * (K+1) + k ------------------
    # The x chain is computed once and reused by both the gate and candidate pass.
    x_chain, h_chain = [], []
    for s in supports:
        xk, hk = x, h
        x_chain.append(xk)
        h_chain.append(hk)
        for _ in range(K):
            xk = jnp.dot(s, xk, preferred_element_type=f32)
            hk = jnp.dot(s, hk, preferred_element_type=f32)
            x_chain.append(xk)
            h_chain.append(hk)

    # ---- update (u) / reset (r) gates: per-chunk accumulation -----------------
    u_acc = jnp.zeros((N, H), f32) + bu_u_ref[...]
    r_acc = jnp.zeros((N, H), f32) + bu_r_ref[...]
    for c in range(2 * K1):
        u_acc = u_acc + jnp.dot(x_chain[c], wux_u_ref[c], preferred_element_type=f32)
        u_acc = u_acc + jnp.dot(h_chain[c], wuh_u_ref[c], preferred_element_type=f32)
        r_acc = r_acc + jnp.dot(x_chain[c], wux_r_ref[c], preferred_element_type=f32)
        r_acc = r_acc + jnp.dot(h_chain[c], wuh_r_ref[c], preferred_element_type=f32)
    u = jax.nn.sigmoid(u_acc)
    r = jax.nn.sigmoid(r_acc)

    # ---- candidate state: diffuse (r * h); reuse the S^k x chain --------------
    rh = r * h
    cand = jnp.zeros((N, H), f32) + bc_ref[...]
    for si, s in enumerate(supports):
        rk = rh
        for k in range(K1):
            if k > 0:
                rk = jnp.dot(s, rk, preferred_element_type=f32)
            c = si * K1 + k
            cand = cand + jnp.dot(x_chain[c], wcx_ref[c], preferred_element_type=f32)
            cand = cand + jnp.dot(rk, wch_ref[c], preferred_element_type=f32)
    hc = jnp.tanh(cand)

    # ---- GRU blend; one dense (N, H) store ------------------------------------
    out_ref[...] = u * h + (1.0 - u) * hc


# -------------------------------- wrapper ------------------------------------

def dcrnn_cell_pallas(inputs, hidden, s0, s1, wu, bu, wc, bc, max_step):
    """inputs: (B, N, Din) f32; hidden: (B, N, H) f32; s0/s1: (N, N) dense supports.
    wu: (F, 2H), wc: (F, H) with F = (Din+H)*(max_step+1)*2; bu: (2H,), bc: (H,)."""
    B, N, Din = inputs.shape
    H = hidden.shape[-1]
    D = Din + H
    n_chunks = 2 * (max_step + 1)
    Dp = ((Din + 7) // 8) * 8                 # sublane-pad the (small) input feature dim

    x_p = jnp.pad(inputs.astype(jnp.float32), ((0, 0), (0, 0), (0, Dp - Din)))
    h_f = hidden.astype(jnp.float32)

    # Split each weight into per-chunk x / h row slices (feature index = chunk*D + d).
    def split_w(w, out_dim):
        w3 = w.reshape(n_chunks, D, out_dim).astype(jnp.float32)
        wx = jnp.pad(w3[:, :Din, :], ((0, 0), (0, Dp - Din), (0, 0)))   # zero-pad rows
        wh = w3[:, Din:, :]
        return wx, wh

    wux, wuh = split_w(wu, 2 * H)             # (n_chunks, Dp, 2H), (n_chunks, H, 2H)
    wcx, wch = split_w(wc, H)                 # (n_chunks, Dp, H),  (n_chunks, H, H)

    # Split update/reset output columns (u first, r second — matches torch.chunk).
    wux_u, wux_r = wux[..., :H], wux[..., H:]
    wuh_u, wuh_r = wuh[..., :H], wuh[..., H:]
    bu_u = bu[:H].reshape(1, H).astype(jnp.float32)
    bu_r = bu[H:].reshape(1, H).astype(jnp.float32)
    bc2 = bc.reshape(1, H).astype(jnp.float32)

    kernel = functools.partial(_dcrnn_cell_kernel, num_nodes=N,
                               hidden_dim=H, max_step=max_step)

    out = pl.pallas_call(
        kernel,
        out_shape=jax.ShapeDtypeStruct((B, N, H), jnp.float32),
        grid=(B,),
        in_specs=[
            pl.BlockSpec((None, N, Dp), lambda b: (b, 0, 0)),          # x (this batch)
            pl.BlockSpec((None, N, H), lambda b: (b, 0, 0)),           # h (this batch)
            pl.BlockSpec((N, N), lambda b: (0, 0)),                    # support 0
            pl.BlockSpec((N, N), lambda b: (0, 0)),                    # support 1
            pl.BlockSpec((n_chunks, Dp, H), lambda b: (0, 0, 0)),      # wux_u
            pl.BlockSpec((n_chunks, H, H), lambda b: (0, 0, 0)),       # wuh_u
            pl.BlockSpec((n_chunks, Dp, H), lambda b: (0, 0, 0)),      # wux_r
            pl.BlockSpec((n_chunks, H, H), lambda b: (0, 0, 0)),       # wuh_r
            pl.BlockSpec((n_chunks, Dp, H), lambda b: (0, 0, 0)),      # wcx
            pl.BlockSpec((n_chunks, H, H), lambda b: (0, 0, 0)),       # wch
            pl.BlockSpec((1, H), lambda b: (0, 0)),                    # bu_u
            pl.BlockSpec((1, H), lambda b: (0, 0)),                    # bu_r
            pl.BlockSpec((1, H), lambda b: (0, 0)),                    # bc
        ],
        out_specs=pl.BlockSpec((None, N, H), lambda b: (b, 0, 0)),
        compiler_params=pltpu.CompilerParams(dimension_semantics=("parallel",)),
    )(x_p, h_f, s0.astype(jnp.float32), s1.astype(jnp.float32),
      wux_u, wuh_u, wux_r, wuh_r, wcx, wch, bu_u, bu_r, bc2)

    return out


# ------------------------------ plain-JAX glue --------------------------------

def random_walk_matrix(adj):
    """D^-1 (A + I); rows with zero degree zeroed (matches the PyTorch helper)."""
    adj = adj + jnp.eye(adj.shape[0], dtype=adj.dtype)
    d = jnp.sum(adj, axis=1)
    d_inv = jnp.where(d == 0.0, 0.0, 1.0 / d)
    return d_inv[:, None] * adj


def xavier_uniform(key, shape):
    fan_in, fan_out = shape
    limit = (6.0 / (fan_in + fan_out)) ** 0.5
    return jax.random.uniform(key, shape, jnp.float32, -limit, limit)


def dcrnn_cell_ref(x, h, s0, s1, wu, bu, wc, bc, max_step):
    """Pure-JAX reference (same semantics as the PyTorch module's forward)."""
    def diff(z):
        chunks = []
        for s in (s0, s1):
            zk = z
            chunks.append(zk)
            for _ in range(max_step):
                zk = jnp.einsum("mn,bnd->bmd", s, zk)
                chunks.append(zk)
        return jnp.concatenate(chunks, axis=-1)

    H = h.shape[-1]
    comb = diff(jnp.concatenate([x, h], axis=-1)) @ wu + bu
    u = jax.nn.sigmoid(comb[..., :H])
    r = jax.nn.sigmoid(comb[..., H:])
    hc = jnp.tanh(diff(jnp.concatenate([x, r * h], axis=-1)) @ wc + bc)
    return u * h + (1.0 - u) * hc


# ----------------------------------- main -------------------------------------

if __name__ == "__main__":
    B, N, Din, H, K = 2, 16, 4, 32, 2

    key = jax.random.PRNGKey(0)
    k_adj, k_x, k_h, k_wu, k_wc = jax.random.split(key, 5)

    # Synthetic adjacency (non-negative, sparsified).
    adj = jax.random.uniform(k_adj, (N, N), jnp.float32)
    adj = jnp.where(adj > 0.7, adj, 0.0)

    # supports = [RW(A).T, RW(A.T).T] exactly as in DCRNNCell.__init__.
    s0 = random_walk_matrix(adj).T
    s1 = random_walk_matrix(adj.T).T

    # Parameters (xavier-uniform weight, zero bias), shapes per the module.
    D = Din + H
    F = D * (K + 1) * 2
    wu = xavier_uniform(k_wu, (F, 2 * H))      # _dc_update weight
    bu = jnp.zeros((2 * H,), jnp.float32)      # _dc_update bias
    wc = xavier_uniform(k_wc, (F, H))          # _dc_candidate weight
    bc = jnp.zeros((H,), jnp.float32)          # _dc_candidate bias
    # NOTE: _dc_reset exists in __init__ but is never used in forward() -> not materialized.

    x = jax.random.normal(k_x, (B, N, Din), jnp.float32)    # inputs
    h0 = jax.random.normal(k_h, (B, N, H), jnp.float32)     # hidden_state

    out = dcrnn_cell_pallas(x, h0, s0, s1, wu, bu, wc, bc, K)
    out = jax.block_until_ready(out)

    ref = dcrnn_cell_ref(x, h0, s0, s1, wu, bu, wc, bc, K)
    assert out.shape == (B, N, H) and out.dtype == jnp.float32
    assert bool(jnp.all(jnp.isfinite(out)))
    assert bool(jnp.allclose(out, ref, atol=1e-3, rtol=1e-3))

    print("KERNEL_OK")
</pallas_src>

<mosaic_0001>
module attributes {stable_mosaic.version = 11 : i64} {
  func.func @_dcrnn_cell_kernel(%arg0: i32, %arg1: memref<1x16x8xf32, #tpu.memory_space<vmem>>, %arg2: memref<1x16x32xf32, #tpu.memory_space<vmem>>, %arg3: memref<16x16xf32, #tpu.memory_space<vmem>>, %arg4: memref<16x16xf32, #tpu.memory_space<vmem>>, %arg5: memref<6x8x32xf32, #tpu.memory_space<vmem>>, %arg6: memref<6x32x32xf32, #tpu.memory_space<vmem>>, %arg7: memref<6x8x32xf32, #tpu.memory_space<vmem>>, %arg8: memref<6x32x32xf32, #tpu.memory_space<vmem>>, %arg9: memref<6x8x32xf32, #tpu.memory_space<vmem>>, %arg10: memref<6x32x32xf32, #tpu.memory_space<vmem>>, %arg11: memref<1x32xf32, #tpu.memory_space<vmem>>, %arg12: memref<1x32xf32, #tpu.memory_space<vmem>>, %arg13: memref<1x32xf32, #tpu.memory_space<vmem>>, %arg14: memref<1x16x32xf32, #tpu.memory_space<vmem>>) attributes {dimension_semantics = [#tpu.dimension_semantics<parallel>], iteration_bounds = array<i64: 2>, scalar_prefetch = 0 : i64, scratch_operands = 0 : i64, tpu.core_type = #tpu.core_type<tc>, window_params = [{transform_indices = @transform_0, window_bounds = array<i64: 1, 16, 8>}, {transform_indices = @transform_1, window_bounds = array<i64: 1, 16, 32>}, {pipeline_mode = #tpu.pipeline_mode<synchronous>, transform_indices = @transform_2, window_bounds = array<i64: 16, 16>}, {pipeline_mode = #tpu.pipeline_mode<synchronous>, transform_indices = @transform_3, window_bounds = array<i64: 16, 16>}, {pipeline_mode = #tpu.pipeline_mode<synchronous>, transform_indices = @transform_4, window_bounds = array<i64: 6, 8, 32>}, {pipeline_mode = #tpu.pipeline_mode<synchronous>, transform_indices = @transform_5, window_bounds = array<i64: 6, 32, 32>}, {pipeline_mode = #tpu.pipeline_mode<synchronous>, transform_indices = @transform_6, window_bounds = array<i64: 6, 8, 32>}, {pipeline_mode = #tpu.pipeline_mode<synchronous>, transform_indices = @transform_7, window_bounds = array<i64: 6, 32, 32>}, {pipeline_mode = #tpu.pipeline_mode<synchronous>, transform_indices = @transform_8, window_bounds = array<i64: 6, 8, 32>}, {pipeline_mode = #tpu.pipeline_mode<synchronous>, transform_indices = @transform_9, window_bounds = array<i64: 6, 32, 32>}, {pipeline_mode = #tpu.pipeline_mode<synchronous>, transform_indices = @transform_10, window_bounds = array<i64: 1, 32>}, {pipeline_mode = #tpu.pipeline_mode<synchronous>, transform_indices = @transform_11, window_bounds = array<i64: 1, 32>}, {pipeline_mode = #tpu.pipeline_mode<synchronous>, transform_indices = @transform_12, window_bounds = array<i64: 1, 32>}, {transform_indices = @transform_13, window_bounds = array<i64: 1, 16, 32>}]} {
    %c0 = arith.constant 0 : index
    %c0_0 = arith.constant 0 : index
    %c0_1 = arith.constant 0 : index
    %0 = vector.load %arg1[%c0, %c0_0, %c0_1] : memref<1x16x8xf32, #tpu.memory_space<vmem>>, vector<1x16x8xf32>
    %1 = vector.shape_cast %0 : vector<1x16x8xf32> to vector<16x8xf32>
    %c0_2 = arith.constant 0 : index
    %c0_3 = arith.constant 0 : index
    %c0_4 = arith.constant 0 : index
    %2 = vector.load %arg2[%c0_2, %c0_3, %c0_4] : memref<1x16x32xf32, #tpu.memory_space<vmem>>, vector<1x16x32xf32>
    %3 = vector.shape_cast %2 : vector<1x16x32xf32> to vector<16x32xf32>
    %c0_5 = arith.constant 0 : index
    %c0_6 = arith.constant 0 : index
    %4 = vector.load %arg3[%c0_5, %c0_6] : memref<16x16xf32, #tpu.memory_space<vmem>>, vector<16x16xf32>
    %c0_7 = arith.constant 0 : index
    %c0_8 = arith.constant 0 : index
    %5 = vector.load %arg4[%c0_7, %c0_8] : memref<16x16xf32, #tpu.memory_space<vmem>>, vector<16x16xf32>
    %cst = arith.constant dense<0.000000e+00> : vector<16x8xf32>
    %6 = tpu.matmul %4, %1, %cst {dimension_numbers = #tpu.dot_dimension_numbers<[1], [0], [0], [1], [0, 0, 1, 1], [], []>} : vector<16x16xf32>, vector<16x8xf32>, vector<16x8xf32> -> vector<16x8xf32>
    %cst_9 = arith.constant dense<0.000000e+00> : vector<16x32xf32>
    %7 = tpu.matmul %4, %3, %cst_9 {dimension_numbers = #tpu.dot_dimension_numbers<[1], [0], [0], [1], [0, 0, 1, 1], [], []>} : vector<16x16xf32>, vector<16x32xf32>, vector<16x32xf32> -> vector<16x32xf32>
    %cst_10 = arith.constant dense<0.000000e+00> : vector<16x8xf32>
    %8 = tpu.matmul %4, %6, %cst_10 {dimension_numbers = #tpu.dot_dimension_numbers<[1], [0], [0], [1], [0, 0, 1, 1], [], []>} : vector<16x16xf32>, vector<16x8xf32>, vector<16x8xf32> -> vector<16x8xf32>
    %cst_11 = arith.constant dense<0.000000e+00> : vector<16x32xf32>
    %9 = tpu.matmul %4, %7, %cst_11 {dimension_numbers = #tpu.dot_dimension_numbers<[1], [0], [0], [1], [0, 0, 1, 1], [], []>} : vector<16x16xf32>, vector<16x32xf32>, vector<16x32xf32> -> vector<16x32xf32>
    %cst_12 = arith.constant dense<0.000000e+00> : vector<16x8xf32>
    %10 = tpu.matmul %5, %1, %cst_12 {dimension_numbers = #tpu.dot_dimension_numbers<[1], [0], [0], [1], [0, 0, 1, 1], [], []>} : vector<16x16xf32>, vector<16x8xf32>, vector<16x8xf32> -> vector<16x8xf32>
    %cst_13 = arith.constant dense<0.000000e+00> : vector<16x32xf32>
    %11 = tpu.matmul %5, %3, %cst_13 {dimension_numbers = #tpu.dot_dimension_numbers<[1], [0], [0], [1], [0, 0, 1, 1], [], []>} : vector<16x16xf32>, vector<16x32xf32>, vector<16x32xf32> -> vector<16x32xf32>
    %cst_14 = arith.constant dense<0.000000e+00> : vector<16x8xf32>
    %12 = tpu.matmul %5, %10, %cst_14 {dimension_numbers = #tpu.dot_dimension_numbers<[1], [0], [0], [1], [0, 0, 1, 1], [], []>} : vector<16x16xf32>, vector<16x8xf32>, vector<16x8xf32> -> vector<16x8xf32>
    %cst_15 = arith.constant dense<0.000000e+00> : vector<16x32xf32>
    %13 = tpu.matmul %5, %11, %cst_15 {dimension_numbers = #tpu.dot_dimension_numbers<[1], [0], [0], [1], [0, 0, 1, 1], [], []>} : vector<16x16xf32>, vector<16x32xf32>, vector<16x32xf32> -> vector<16x32xf32>
    %cst_16 = arith.constant 0.000000e+00 : f32
    %14 = vector.broadcast %cst_16 : f32 to vector<16x32xf32>
    %c0_17 = arith.constant 0 : index
    %c0_18 = arith.constant 0 : index
    %15 = vector.load %arg11[%c0_17, %c0_18] : memref<1x32xf32, #tpu.memory_space<vmem>>, vector<1x32xf32>
    %16 = vector.broadcast %15 : vector<1x32xf32> to vector<16x32xf32>
    %17 = arith.addf %14, %16 : vector<16x32xf32>
    %cst_19 = arith.constant 0.000000e+00 : f32
    %18 = vector.broadcast %cst_19 : f32 to vector<16x32xf32>
    %c0_20 = arith.constant 0 : index
    %c0_21 = arith.constant 0 : index
    %19 = vector.load %arg12[%c0_20, %c0_21] : memref<1x32xf32, #tpu.memory_space<vmem>>, vector<1x32xf32>
    %20 = vector.broadcast %19 : vector<1x32xf32> to vector<16x32xf32>
    %21 = arith.addf %18, %20 : vector<16x32xf32>
    %c0_22 = arith.constant 0 : index
    %c0_23 = arith.constant 0 : index
    %c0_24 = arith.constant 0 : index
    %22 = vector.load %arg5[%c0_22, %c0_23, %c0_24] : memref<6x8x32xf32, #tpu.memory_space<vmem>>, vector<1x8x32xf32>
    %23 = vector.shape_cast %22 : vector<1x8x32xf32> to vector<8x32xf32>
    %cst_25 = arith.constant dense<0.000000e+00> : vector<16x32xf32>
    %24 = tpu.matmul %1, %23, %cst_25 {dimension_numbers = #tpu.dot_dimension_numbers<[1], [0], [0], [1], [0, 0, 1, 1], [], []>} : vector<16x8xf32>, vector<8x32xf32>, vector<16x32xf32> -> vector<16x32xf32>
    %25 = arith.addf %17, %24 : vector<16x32xf32>
    %c0_26 = arith.constant 0 : index
    %c0_27 = arith.constant 0 : index
    %c0_28 = arith.constant 0 : index
    %26 = vector.load %arg6[%c0_26, %c0_27, %c0_28] : memref<6x32x32xf32, #tpu.memory_space<vmem>>, vector<1x32x32xf32>
    %27 = vector.shape_cast %26 : vector<1x32x32xf32> to vector<32x32xf32>
    %cst_29 = arith.constant dense<0.000000e+00> : vector<16x32xf32>
    %28 = tpu.matmul %3, %27, %cst_29 {dimension_numbers = #tpu.dot_dimension_numbers<[1], [0], [0], [1], [0, 0, 1, 1], [], []>} : vector<16x32xf32>, vector<32x32xf32>, vector<16x32xf32> -> vector<16x32xf32>
    %29 = arith.addf %25, %28 : vector<16x32xf32>
    %c0_30 = arith.constant 0 : index
    %c0_31 = arith.constant 0 : index
    %c0_32 = arith.constant 0 : index
    %30 = vector.load %arg7[%c0_30, %c0_31, %c0_32] : memref<6x8x32xf32, #tpu.memory_space<vmem>>, vector<1x8x32xf32>
    %31 = vector.shape_cast %30 : vector<1x8x32xf32> to vector<8x32xf32>
    %cst_33 = arith.constant dense<0.000000e+00> : vector<16x32xf32>
    %32 = tpu.matmul %1, %31, %cst_33 {dimension_numbers = #tpu.dot_dimension_numbers<[1], [0], [0], [1], [0, 0, 1, 1], [], []>} : vector<16x8xf32>, vector<8x32xf32>, vector<16x32xf32> -> vector<16x32xf32>
    %33 = arith.addf %21, %32 : vector<16x32xf32>
    %c0_34 = arith.constant 0 : index
    %c0_35 = arith.constant 0 : index
    %c0_36 = arith.constant 0 : index
    %34 = vector.load %arg8[%c0_34, %c0_35, %c0_36] : memref<6x32x32xf32, #tpu.memory_space<vmem>>, vector<1x32x32xf32>
    %35 = vector.shape_cast %34 : vector<1x32x32xf32> to vector<32x32xf32>
    %cst_37 = arith.constant dense<0.000000e+00> : vector<16x32xf32>
    %36 = tpu.matmul %3, %35, %cst_37 {dimension_numbers = #tpu.dot_dimension_numbers<[1], [0], [0], [1], [0, 0, 1, 1], [], []>} : vector<16x32xf32>, vector<32x32xf32>, vector<16x32xf32> -> vector<16x32xf32>
    %37 = arith.addf %33, %36 : vector<16x32xf32>
    %c1 = arith.constant 1 : index
    %c0_38 = arith.constant 0 : index
    %c0_39 = arith.constant 0 : index
    %38 = vector.load %arg5[%c1, %c0_38, %c0_39] : memref<6x8x32xf32, #tpu.memory_space<vmem>>, vector<1x8x32xf32>
    %39 = vector.shape_cast %38 : vector<1x8x32xf32> to vector<8x32xf32>
    %cst_40 = arith.constant dense<0.000000e+00> : vector<16x32xf32>
    %40 = tpu.matmul %6, %39, %cst_40 {dimension_numbers = #tpu.dot_dimension_numbers<[1], [0], [0], [1], [0, 0, 1, 1], [], []>} : vector<16x8xf32>, vector<8x32xf32>, vector<16x32xf32> -> vector<16x32xf32>
    %41 = arith.addf %29, %40 : vector<16x32xf32>
    %c1_41 = arith.constant 1 : index
    %c0_42 = arith.constant 0 : index
    %c0_43 = arith.constant 0 : index
    %42 = vector.load %arg6[%c1_41, %c0_42, %c0_43] : memref<6x32x32xf32, #tpu.memory_space<vmem>>, vector<1x32x32xf32>
    %43 = vector.shape_cast %42 : vector<1x32x32xf32> to vector<32x32xf32>
    %cst_44 = arith.constant dense<0.000000e+00> : vector<16x32xf32>
    %44 = tpu.matmul %7, %43, %cst_44 {dimension_numbers = #tpu.dot_dimension_numbers<[1], [0], [0], [1], [0, 0, 1, 1], [], []>} : vector<16x32xf32>, vector<32x32xf32>, vector<16x32xf32> -> vector<16x32xf32>
    %45 = arith.addf %41, %44 : vector<16x32xf32>
    %c1_45 = arith.constant 1 : index
    %c0_46 = arith.constant 0 : index
    %c0_47 = arith.constant 0 : index
    %46 = vector.load %arg7[%c1_45, %c0_46, %c0_47] : memref<6x8x32xf32, #tpu.memory_space<vmem>>, vector<1x8x32xf32>
    %47 = vector.shape_cast %46 : vector<1x8x32xf32> to vector<8x32xf32>
    %cst_48 = arith.constant dense<0.000000e+00> : vector<16x32xf32>
    %48 = tpu.matmul %6, %47, %cst_48 {dimension_numbers = #tpu.dot_dimension_numbers<[1], [0], [0], [1], [0, 0, 1, 1], [], []>} : vector<16x8xf32>, vector<8x32xf32>, vector<16x32xf32> -> vector<16x32xf32>
    %49 = arith.addf %37, %48 : vector<16x32xf32>
    %c1_49 = arith.constant 1 : index
    %c0_50 = arith.constant 0 : index
    %c0_51 = arith.constant 0 : index
    %50 = vector.load %arg8[%c1_49, %c0_50, %c0_51] : memref<6x32x32xf32, #tpu.memory_space<vmem>>, vector<1x32x32xf32>
    %51 = vector.shape_cast %50 : vector<1x32x32xf32> to vector<32x32xf32>
    %cst_52 = arith.constant dense<0.000000e+00> : vector<16x32xf32>
    %52 = tpu.matmul %7, %51, %cst_52 {dimension_numbers = #tpu.dot_dimension_numbers<[1], [0], [0], [1], [0, 0, 1, 1], [], []>} : vector<16x32xf32>, vector<32x32xf32>, vector<16x32xf32> -> vector<16x32xf32>
    %53 = arith.addf %49, %52 : vector<16x32xf32>
    %c2 = arith.constant 2 : index
    %c0_53 = arith.constant 0 : index
    %c0_54 = arith.constant 0 : index
    %54 = vector.load %arg5[%c2, %c0_53, %c0_54] : memref<6x8x32xf32, #tpu.memory_space<vmem>>, vector<1x8x32xf32>
    %55 = vector.shape_cast %54 : vector<1x8x32xf32> to vector<8x32xf32>
    %cst_55 = arith.constant dense<0.000000e+00> : vector<16x32xf32>
    %56 = tpu.matmul %8, %55, %cst_55 {dimension_numbers = #tpu.dot_dimension_numbers<[1], [0], [0], [1], [0, 0, 1, 1], [], []>} : vector<16x8xf32>, vector<8x32xf32>, vector<16x32xf32> -> vector<16x32xf32>
    %57 = arith.addf %45, %56 : vector<16x32xf32>
    %c2_56 = arith.constant 2 : index
    %c0_57 = arith.constant 0 : index
    %c0_58 = arith.constant 0 : index
    %58 = vector.load %arg6[%c2_56, %c0_57, %c0_58] : memref<6x32x32xf32, #tpu.memory_space<vmem>>, vector<1x32x32xf32>
    %59 = vector.shape_cast %58 : vector<1x32x32xf32> to vector<32x32xf32>
    %cst_59 = arith.constant dense<0.000000e+00> : vector<16x32xf32>
    %60 = tpu.matmul %9, %59, %cst_59 {dimension_numbers = #tpu.dot_dimension_numbers<[1], [0], [0], [1], [0, 0, 1, 1], [], []>} : vector<16x32xf32>, vector<32x32xf32>, vector<16x32xf32> -> vector<16x32xf32>
    %61 = arith.addf %57, %60 : vector<16x32xf32>
    %c2_60 = arith.constant 2 : index
    %c0_61 = arith.constant 0 : index
    %c0_62 = arith.constant 0 : index
    %62 = vector.load %arg7[%c2_60, %c0_61, %c0_62] : memref<6x8x32xf32, #tpu.memory_space<vmem>>, vector<1x8x32xf32>
    %63 = vector.shape_cast %62 : vector<1x8x32xf32> to vector<8x32xf32>
    %cst_63 = arith.constant dense<0.000000e+00> : vector<16x32xf32>
    %64 = tpu.matmul %8, %63, %cst_63 {dimension_numbers = #tpu.dot_dimension_numbers<[1], [0], [0], [1], [0, 0, 1, 1], [], []>} : vector<16x8xf32>, vector<8x32xf32>, vector<16x32xf32> -> vector<16x32xf32>
    %65 = arith.addf %53, %64 : vector<16x32xf32>
    %c2_64 = arith.constant 2 : index
    %c0_65 = arith.constant 0 : index
    %c0_66 = arith.constant 0 : index
    %66 = vector.load %arg8[%c2_64, %c0_65, %c0_66] : memref<6x32x32xf32, #tpu.memory_space<vmem>>, vector<1x32x32xf32>
    %67 = vector.shape_cast %66 : vector<1x32x32xf32> to vector<32x32xf32>
    %cst_67 = arith.constant dense<0.000000e+00> : vector<16x32xf32>
    %68 = tpu.matmul %9, %67, %cst_67 {dimension_numbers = #tpu.dot_dimension_numbers<[1], [0], [0], [1], [0, 0, 1, 1], [], []>} : vector<16x32xf32>, vector<32x32xf32>, vector<16x32xf32> -> vector<16x32xf32>
    %69 = arith.addf %65, %68 : vector<16x32xf32>
    %c3 = arith.constant 3 : index
    %c0_68 = arith.constant 0 : index
    %c0_69 = arith.constant 0 : index
    %70 = vector.load %arg5[%c3, %c0_68, %c0_69] : memref<6x8x32xf32, #tpu.memory_space<vmem>>, vector<1x8x32xf32>
    %71 = vector.shape_cast %70 : vector<1x8x32xf32> to vector<8x32xf32>
    %cst_70 = arith.constant dense<0.000000e+00> : vector<16x32xf32>
    %72 = tpu.matmul %1, %71, %cst_70 {dimension_numbers = #tpu.dot_dimension_numbers<[1], [0], [0], [1], [0, 0, 1, 1], [], []>} : vector<16x8xf32>, vector<8x32xf32>, vector<16x32xf32> -> vector<16x32xf32>
    %73 = arith.addf %61, %72 : vector<16x32xf32>
    %c3_71 = arith.constant 3 : index
    %c0_72 = arith.constant 0 : index
    %c0_73 = arith.constant 0 : index
    %74 = vector.load %arg6[%c3_71, %c0_72, %c0_73] : memref<6x32x32xf32, #tpu.memory_space<vmem>>, vector<1x32x32xf32>
    %75 = vector.shape_cast %74 : vector<1x32x32xf32> to vector<32x32xf32>
    %cst_74 = arith.constant dense<0.000000e+00> : vector<16x32xf32>
    %76 = tpu.matmul %3, %75, %cst_74 {dimension_numbers = #tpu.dot_dimension_numbers<[1], [0], [0], [1], [0, 0, 1, 1], [], []>} : vector<16x32xf32>, vector<32x32xf32>, vector<16x32xf32> -> vector<16x32xf32>
    %77 = arith.addf %73, %76 : vector<16x32xf32>
    %c3_75 = arith.constant 3 : index
    %c0_76 = arith.constant 0 : index
    %c0_77 = arith.constant 0 : index
    %78 = vector.load %arg7[%c3_75, %c0_76, %c0_77] : memref<6x8x32xf32, #tpu.memory_space<vmem>>, vector<1x8x32xf32>
    %79 = vector.shape_cast %78 : vector<1x8x32xf32> to vector<8x32xf32>
    %cst_78 = arith.constant dense<0.000000e+00> : vector<16x32xf32>
    %80 = tpu.matmul %1, %79, %cst_78 {dimension_numbers = #tpu.dot_dimension_numbers<[1], [0], [0], [1], [0, 0, 1, 1], [], []>} : vector<16x8xf32>, vector<8x32xf32>, vector<16x32xf32> -> vector<16x32xf32>
    %81 = arith.addf %69, %80 : vector<16x32xf32>
    %c3_79 = arith.constant 3 : index
    %c0_80 = arith.constant 0 : index
    %c0_81 = arith.constant 0 : index
    %82 = vector.load %arg8[%c3_79, %c0_80, %c0_81] : memref<6x32x32xf32, #tpu.memory_space<vmem>>, vector<1x32x32xf32>
    %83 = vector.shape_cast %82 : vector<1x32x32xf32> to vector<32x32xf32>
    %cst_82 = arith.constant dense<0.000000e+00> : vector<16x32xf32>
    %84 = tpu.matmul %3, %83, %cst_82 {dimension_numbers = #tpu.dot_dimension_numbers<[1], [0], [0], [1], [0, 0, 1, 1], [], []>} : vector<16x32xf32>, vector<32x32xf32>, vector<16x32xf32> -> vector<16x32xf32>
    %85 = arith.addf %81, %84 : vector<16x32xf32>
    %c4 = arith.constant 4 : index
    %c0_83 = arith.constant 0 : index
    %c0_84 = arith.constant 0 : index
    %86 = vector.load %arg5[%c4, %c0_83, %c0_84] : memref<6x8x32xf32, #tpu.memory_space<vmem>>, vector<1x8x32xf32>
    %87 = vector.shape_cast %86 : vector<1x8x32xf32> to vector<8x32xf32>
    %cst_85 = arith.constant dense<0.000000e+00> : vector<16x32xf32>
    %88 = tpu.matmul %10, %87, %cst_85 {dimension_numbers = #tpu.dot_dimension_numbers<[1], [0], [0], [1], [0, 0, 1, 1], [], []>} : vector<16x8xf32>, vector<8x32xf32>, vector<16x32xf32> -> vector<16x32xf32>
    %89 = arith.addf %77, %88 : vector<16x32xf32>
    %c4_86 = arith.constant 4 : index
    %c0_87 = arith.constant 0 : index
    %c0_88 = arith.constant 0 : index
    %90 = vector.load %arg6[%c4_86, %c0_87, %c0_88] : memref<6x32x32xf32, #tpu.memory_space<vmem>>, vector<1x32x32xf32>
    %91 = vector.shape_cast %90 : vector<1x32x32xf32> to vector<32x32xf32>
    %cst_89 = arith.constant dense<0.000000e+00> : vector<16x32xf32>
    %92 = tpu.matmul %11, %91, %cst_89 {dimension_numbers = #tpu.dot_dimension_numbers<[1], [0], [0], [1], [0, 0, 1, 1], [], []>} : vector<16x32xf32>, vector<32x32xf32>, vector<16x32xf32> -> vector<16x32xf32>
    %93 = arith.addf %89, %92 : vector<16x32xf32>
    %c4_90 = arith.constant 4 : index
    %c0_91 = arith.constant 0 : index
    %c0_92 = arith.constant 0 : index
    %94 = vector.load %arg7[%c4_90, %c0_91, %c0_92] : memref<6x8x32xf32, #tpu.memory_space<vmem>>, vector<1x8x32xf32>
    %95 = vector.shape_cast %94 : vector<1x8x32xf32> to vector<8x32xf32>
    %cst_93 = arith.constant dense<0.000000e+00> : vector<16x32xf32>
    %96 = tpu.matmul %10, %95, %cst_93 {dimension_numbers = #tpu.dot_dimension_numbers<[1], [0], [0], [1], [0, 0, 1, 1], [], []>} : vector<16x8xf32>, vector<8x32xf32>, vector<16x32xf32> -> vector<16x32xf32>
    %97 = arith.addf %85, %96 : vector<16x32xf32>
    %c4_94 = arith.constant 4 : index
    %c0_95 = arith.constant 0 : index
    %c0_96 = arith.constant 0 : index
    %98 = vector.load %arg8[%c4_94, %c0_95, %c0_96] : memref<6x32x32xf32, #tpu.memory_space<vmem>>, vector<1x32x32xf32>
    %99 = vector.shape_cast %98 : vector<1x32x32xf32> to vector<32x32xf32>
    %cst_97 = arith.constant dense<0.000000e+00> : vector<16x32xf32>
    %100 = tpu.matmul %11, %99, %cst_97 {dimension_numbers = #tpu.dot_dimension_numbers<[1], [0], [0], [1], [0, 0, 1, 1], [], []>} : vector<16x32xf32>, vector<32x32xf32>, vector<16x32xf32> -> vector<16x32xf32>
    %101 = arith.addf %97, %100 : vector<16x32xf32>
    %c5 = arith.constant 5 : index
    %c0_98 = arith.constant 0 : index
    %c0_99 = arith.constant 0 : index
    %102 = vector.load %arg5[%c5, %c0_98, %c0_99] : memref<6x8x32xf32, #tpu.memory_space<vmem>>, vector<1x8x32xf32>
    %103 = vector.shape_cast %102 : vector<1x8x32xf32> to vector<8x32xf32>
    %cst_100 = arith.constant dense<0.000000e+00> : vector<16x32xf32>
    %104 = tpu.matmul %12, %103, %cst_100 {dimension_numbers = #tpu.dot_dimension_numbers<[1], [0], [0], [1], [0, 0, 1, 1], [], []>} : vector<16x8xf32>, vector<8x32xf32>, vector<16x32xf32> -> vector<16x32xf32>
    %105 = arith.addf %93, %104 : vector<16x32xf32>
    %c5_101 = arith.constant 5 : index
    %c0_102 = arith.constant 0 : index
    %c0_103 = arith.constant 0 : index
    %106 = vector.load %arg6[%c5_101, %c0_102, %c0_103] : memref<6x32x32xf32, #tpu.memory_space<vmem>>, vector<1x32x32xf32>
    %107 = vector.shape_cast %106 : vector<1x32x32xf32> to vector<32x32xf32>
    %cst_104 = arith.constant dense<0.000000e+00> : vector<16x32xf32>
    %108 = tpu.matmul %13, %107, %cst_104 {dimension_numbers = #tpu.dot_dimension_numbers<[1], [0], [0], [1], [0, 0, 1, 1], [], []>} : vector<16x32xf32>, vector<32x32xf32>, vector<16x32xf32> -> vector<16x32xf32>
    %109 = arith.addf %105, %108 : vector<16x32xf32>
    %c5_105 = arith.constant 5 : index
    %c0_106 = arith.constant 0 : index
    %c0_107 = arith.constant 0 : index
    %110 = vector.load %arg7[%c5_105, %c0_106, %c0_107] : memref<6x8x32xf32, #tpu.memory_space<vmem>>, vector<1x8x32xf32>
    %111 = vector.shape_cast %110 : vector<1x8x32xf32> to vector<8x32xf32>
    %cst_108 = arith.constant dense<0.000000e+00> : vector<16x32xf32>
    %112 = tpu.matmul %12, %111, %cst_108 {dimension_numbers = #tpu.dot_dimension_numbers<[1], [0], [0], [1], [0, 0, 1, 1], [], []>} : vector<16x8xf32>, vector<8x32xf32>, vector<16x32xf32> -> vector<16x32xf32>
    %113 = arith.addf %101, %112 : vector<16x32xf32>
    %c5_109 = arith.constant 5 : index
    %c0_110 = arith.constant 0 : index
    %c0_111 = arith.constant 0 : index
    %114 = vector.load %arg8[%c5_109, %c0_110, %c0_111] : memref<6x32x32xf32, #tpu.memory_space<vmem>>, vector<1x32x32xf32>
    %115 = vector.shape_cast %114 : vector<1x32x32xf32> to vector<32x32xf32>
    %cst_112 = arith.constant dense<0.000000e+00> : vector<16x32xf32>
    %116 = tpu.matmul %13, %115, %cst_112 {dimension_numbers = #tpu.dot_dimension_numbers<[1], [0], [0], [1], [0, 0, 1, 1], [], []>} : vector<16x32xf32>, vector<32x32xf32>, vector<16x32xf32> -> vector<16x32xf32>
    %117 = arith.addf %113, %116 : vector<16x32xf32>
    %118 = arith.negf %109 : vector<16x32xf32>
    %119 = math.exp %118 : vector<16x32xf32>
    %cst_113 = arith.constant 1.000000e+00 : f32
    %120 = vector.broadcast %cst_113 : f32 to vector<16x32xf32>
    %121 = arith.addf %120, %119 : vector<16x32xf32>
    %122 = arith.divf %120, %121 : vector<16x32xf32>
    %123 = arith.negf %117 : vector<16x32xf32>
    %124 = math.exp %123 : vector<16x32xf32>
    %cst_114 = arith.constant 1.000000e+00 : f32
    %125 = vector.broadcast %cst_114 : f32 to vector<16x32xf32>
    %126 = arith.addf %125, %124 : vector<16x32xf32>
    %127 = arith.divf %125, %126 : vector<16x32xf32>
    %128 = arith.mulf %127, %3 : vector<16x32xf32>
    %cst_115 = arith.constant 0.000000e+00 : f32
    %129 = vector.broadcast %cst_115 : f32 to vector<16x32xf32>
    %c0_116 = arith.constant 0 : index
    %c0_117 = arith.constant 0 : index
    %130 = vector.load %arg13[%c0_116, %c0_117] : memref<1x32xf32, #tpu.memory_space<vmem>>, vector<1x32xf32>
    %131 = vector.broadcast %130 : vector<1x32xf32> to vector<16x32xf32>
    %132 = arith.addf %129, %131 : vector<16x32xf32>
    %c0_118 = arith.constant 0 : index
    %c0_119 = arith.constant 0 : index
    %c0_120 = arith.constant 0 : index
    %133 = vector.load %arg9[%c0_118, %c0_119, %c0_120] : memref<6x8x32xf32, #tpu.memory_space<vmem>>, vector<1x8x32xf32>
    %134 = vector.shape_cast %133 : vector<1x8x32xf32> to vector<8x32xf32>
    %cst_121 = arith.constant dense<0.000000e+00> : vector<16x32xf32>
    %135 = tpu.matmul %1, %134, %cst_121 {dimension_numbers = #tpu.dot_dimension_numbers<[1], [0], [0], [1], [0, 0, 1, 1], [], []>} : vector<16x8xf32>, vector<8x32xf32>, vector<16x32xf32> -> vector<16x32xf32>
    %136 = arith.addf %132, %135 : vector<16x32xf32>
    %c0_122 = arith.constant 0 : index
    %c0_123 = arith.constant 0 : index
    %c0_124 = arith.constant 0 : index
    %137 = vector.load %arg10[%c0_122, %c0_123, %c0_124] : memref<6x32x32xf32, #tpu.memory_space<vmem>>, vector<1x32x32xf32>
    %138 = vector.shape_cast %137 : vector<1x32x32xf32> to vector<32x32xf32>
    %cst_125 = arith.constant dense<0.000000e+00> : vector<16x32xf32>
    %139 = tpu.matmul %128, %138, %cst_125 {dimension_numbers = #tpu.dot_dimension_numbers<[1], [0], [0], [1], [0, 0, 1, 1], [], []>} : vector<16x32xf32>, vector<32x32xf32>, vector<16x32xf32> -> vector<16x32xf32>
    %140 = arith.addf %136, %139 : vector<16x32xf32>
    %cst_126 = arith.constant dense<0.000000e+00> : vector<16x32xf32>
    %141 = tpu.matmul %4, %128, %cst_126 {dimension_numbers = #tpu.dot_dimension_numbers<[1], [0], [0], [1], [0, 0, 1, 1], [], []>} : vector<16x16xf32>, vector<16x32xf32>, vector<16x32xf32> -> vector<16x32xf32>
    %c1_127 = arith.constant 1 : index
    %c0_128 = arith.constant 0 : index
    %c0_129 = arith.constant 0 : index
    %142 = vector.load %arg9[%c1_127, %c0_128, %c0_129] : memref<6x8x32xf32, #tpu.memory_space<vmem>>, vector<1x8x32xf32>
    %143 = vector.shape_cast %142 : vector<1x8x32xf32> to vector<8x32xf32>
    %cst_130 = arith.constant dense<0.000000e+00> : vector<16x32xf32>
    %144 = tpu.matmul %6, %143, %cst_130 {dimension_numbers = #tpu.dot_dimension_numbers<[1], [0], [0], [1], [0, 0, 1, 1], [], []>} : vector<16x8xf32>, vector<8x32xf32>, vector<16x32xf32> -> vector<16x32xf32>
    %145 = arith.addf %140, %144 : vector<16x32xf32>
    %c1_131 = arith.constant 1 : index
    %c0_132 = arith.constant 0 : index
    %c0_133 = arith.constant 0 : index
    %146 = vector.load %arg10[%c1_131, %c0_132, %c0_133] : memref<6x32x32xf32, #tpu.memory_space<vmem>>, vector<1x32x32xf32>
    %147 = vector.shape_cast %146 : vector<1x32x32xf32> to vector<32x32xf32>
    %cst_134 = arith.constant dense<0.000000e+00> : vector<16x32xf32>
    %148 = tpu.matmul %141, %147, %cst_134 {dimension_numbers = #tpu.dot_dimension_numbers<[1], [0], [0], [1], [0, 0, 1, 1], [], []>} : vector<16x32xf32>, vector<32x32xf32>, vector<16x32xf32> -> vector<16x32xf32>
    %149 = arith.addf %145, %148 : vector<16x32xf32>
    %cst_135 = arith.constant dense<0.000000e+00> : vector<16x32xf32>
    %150 = tpu.matmul %4, %141, %cst_135 {dimension_numbers = #tpu.dot_dimension_numbers<[1], [0], [0], [1], [0, 0, 1, 1], [], []>} : vector<16x16xf32>, vector<16x32xf32>, vector<16x32xf32> -> vector<16x32xf32>
    %c2_136 = arith.constant 2 : index
    %c0_137 = arith.constant 0 : index
    %c0_138 = arith.constant 0 : index
    %151 = vector.load %arg9[%c2_136, %c0_137, %c0_138] : memref<6x8x32xf32, #tpu.memory_space<vmem>>, vector<1x8x32xf32>
    %152 = vector.shape_cast %151 : vector<1x8x32xf32> to vector<8x32xf32>
    %cst_139 = arith.constant dense<0.000000e+00> : vector<16x32xf32>
    %153 = tpu.matmul %8, %152, %cst_139 {dimension_numbers = #tpu.dot_dimension_numbers<[1], [0], [0], [1], [0, 0, 1, 1], [], []>} : vector<16x8xf32>, vector<8x32xf32>, vector<16x32xf32> -> vector<16x32xf32>
    %154 = arith.addf %149, %153 : vector<16x32xf32>
    %c2_140 = arith.constant 2 : index
    %c0_141 = arith.constant 0 : index
    %c0_142 = arith.constant 0 : index
    %155 = vector.load %arg10[%c2_140, %c0_141, %c0_142] : memref<6x32x32xf32, #tpu.memory_space<vmem>>, vector<1x32x32xf32>
    %156 = vector.shape_cast %155 : vector<1x32x32xf32> to vector<32x32xf32>
    %cst_143 = arith.constant dense<0.000000e+00> : vector<16x32xf32>
    %157 = tpu.matmul %150, %156, %cst_143 {dimension_numbers = #tpu.dot_dimension_numbers<[1], [0], [0], [1], [0, 0, 1, 1], [], []>} : vector<16x32xf32>, vector<32x32xf32>, vector<16x32xf32> -> vector<16x32xf32>
    %158 = arith.addf %154, %157 : vector<16x32xf32>
    %c3_144 = arith.constant 3 : index
    %c0_145 = arith.constant 0 : index
    %c0_146 = arith.constant 0 : index
    %159 = vector.load %arg9[%c3_144, %c0_145, %c0_146] : memref<6x8x32xf32, #tpu.memory_space<vmem>>, vector<1x8x32xf32>
    %160 = vector.shape_cast %159 : vector<1x8x32xf32> to vector<8x32xf32>
    %cst_147 = arith.constant dense<0.000000e+00> : vector<16x32xf32>
    %161 = tpu.matmul %1, %160, %cst_147 {dimension_numbers = #tpu.dot_dimension_numbers<[1], [0], [0], [1], [0, 0, 1, 1], [], []>} : vector<16x8xf32>, vector<8x32xf32>, vector<16x32xf32> -> vector<16x32xf32>
    %162 = arith.addf %158, %161 : vector<16x32xf32>
    %c3_148 = arith.constant 3 : index
    %c0_149 = arith.constant 0 : index
    %c0_150 = arith.constant 0 : index
    %163 = vector.load %arg10[%c3_148, %c0_149, %c0_150] : memref<6x32x32xf32, #tpu.memory_space<vmem>>, vector<1x32x32xf32>
    %164 = vector.shape_cast %163 : vector<1x32x32xf32> to vector<32x32xf32>
    %cst_151 = arith.constant dense<0.000000e+00> : vector<16x32xf32>
    %165 = tpu.matmul %128, %164, %cst_151 {dimension_numbers = #tpu.dot_dimension_numbers<[1], [0], [0], [1], [0, 0, 1, 1], [], []>} : vector<16x32xf32>, vector<32x32xf32>, vector<16x32xf32> -> vector<16x32xf32>
    %166 = arith.addf %162, %165 : vector<16x32xf32>
    %cst_152 = arith.constant dense<0.000000e+00> : vector<16x32xf32>
    %167 = tpu.matmul %5, %128, %cst_152 {dimension_numbers = #tpu.dot_dimension_numbers<[1], [0], [0], [1], [0, 0, 1, 1], [], []>} : vector<16x16xf32>, vector<16x32xf32>, vector<16x32xf32> -> vector<16x32xf32>
    %c4_153 = arith.constant 4 : index
    %c0_154 = arith.constant 0 : index
    %c0_155 = arith.constant 0 : index
    %168 = vector.load %arg9[%c4_153, %c0_154, %c0_155] : memref<6x8x32xf32, #tpu.memory_space<vmem>>, vector<1x8x32xf32>
    %169 = vector.shape_cast %168 : vector<1x8x32xf32> to vector<8x32xf32>
    %cst_156 = arith.constant dense<0.000000e+00> : vector<16x32xf32>
    %170 = tpu.matmul %10, %169, %cst_156 {dimension_numbers = #tpu.dot_dimension_numbers<[1], [0], [0], [1], [0, 0, 1, 1], [], []>} : vector<16x8xf32>, vector<8x32xf32>, vector<16x32xf32> -> vector<16x32xf32>
    %171 = arith.addf %166, %170 : vector<16x32xf32>
    %c4_157 = arith.constant 4 : index
    %c0_158 = arith.constant 0 : index
    %c0_159 = arith.constant 0 : index
    %172 = vector.load %arg10[%c4_157, %c0_158, %c0_159] : memref<6x32x32xf32, #tpu.memory_space<vmem>>, vector<1x32x32xf32>
    %173 = vector.shape_cast %172 : vector<1x32x32xf32> to vector<32x32xf32>
    %cst_160 = arith.constant dense<0.000000e+00> : vector<16x32xf32>
    %174 = tpu.matmul %167, %173, %cst_160 {dimension_numbers = #tpu.dot_dimension_numbers<[1], [0], [0], [1], [0, 0, 1, 1], [], []>} : vector<16x32xf32>, vector<32x32xf32>, vector<16x32xf32> -> vector<16x32xf32>
    %175 = arith.addf %171, %174 : vector<16x32xf32>
    %cst_161 = arith.constant dense<0.000000e+00> : vector<16x32xf32>
    %176 = tpu.matmul %5, %167, %cst_161 {dimension_numbers = #tpu.dot_dimension_numbers<[1], [0], [0], [1], [0, 0, 1, 1], [], []>} : vector<16x16xf32>, vector<16x32xf32>, vector<16x32xf32> -> vector<16x32xf32>
    %c5_162 = arith.constant 5 : index
    %c0_163 = arith.constant 0 : index
    %c0_164 = arith.constant 0 : index
    %177 = vector.load %arg9[%c5_162, %c0_163, %c0_164] : memref<6x8x32xf32, #tpu.memory_space<vmem>>, vector<1x8x32xf32>
    %178 = vector.shape_cast %177 : vector<1x8x32xf32> to vector<8x32xf32>
    %cst_165 = arith.constant dense<0.000000e+00> : vector<16x32xf32>
    %179 = tpu.matmul %12, %178, %cst_165 {dimension_numbers = #tpu.dot_dimension_numbers<[1], [0], [0], [1], [0, 0, 1, 1], [], []>} : vector<16x8xf32>, vector<8x32xf32>, vector<16x32xf32> -> vector<16x32xf32>
    %180 = arith.addf %175, %179 : vector<16x32xf32>
    %c5_166 = arith.constant 5 : index
    %c0_167 = arith.constant 0 : index
    %c0_168 = arith.constant 0 : index
    %181 = vector.load %arg10[%c5_166, %c0_167, %c0_168] : memref<6x32x32xf32, #tpu.memory_space<vmem>>, vector<1x32x32xf32>
    %182 = vector.shape_cast %181 : vector<1x32x32xf32> to vector<32x32xf32>
    %cst_169 = arith.constant dense<0.000000e+00> : vector<16x32xf32>
    %183 = tpu.matmul %176, %182, %cst_169 {dimension_numbers = #tpu.dot_dimension_numbers<[1], [0], [0], [1], [0, 0, 1, 1], [], []>} : vector<16x32xf32>, vector<32x32xf32>, vector<16x32xf32> -> vector<16x32xf32>
    %184 = arith.addf %180, %183 : vector<16x32xf32>
    %185 = math.tanh %184 : vector<16x32xf32>
    %186 = arith.mulf %122, %3 : vector<16x32xf32>
    %cst_170 = arith.constant 1.000000e+00 : f32
    %187 = vector.broadcast %cst_170 : f32 to vector<16x32xf32>
    %188 = arith.subf %187, %122 : vector<16x32xf32>
    %189 = arith.mulf %188, %185 : vector<16x32xf32>
    %190 = arith.addf %186, %189 : vector<16x32xf32>
    %c0_171 = arith.constant 0 : index
    %c0_172 = arith.constant 0 : index
    %c0_173 = arith.constant 0 : index
    %191 = vector.load %arg14[%c0_171, %c0_172, %c0_173] : memref<1x16x32xf32, #tpu.memory_space<vmem>>, vector<1x16x32xf32>
    %192 = vector.shape_cast %191 : vector<1x16x32xf32> to vector<16x32xf32>
    %193 = vector.shape_cast %190 : vector<16x32xf32> to vector<1x16x32xf32>
    tpu.vector_store %arg14[%c0_171, %c0_172, %c0_173], %193 {strides = array<i32>} : memref<1x16x32xf32, #tpu.memory_space<vmem>>, vector<1x16x32xf32>,
    return
  }
  func.func @transform_0(%arg0: i32) -> (i32, i32, i32) {
    %c0_i32 = arith.constant 0 : i32
    %c0_i32_0 = arith.constant 0 : i32
    %c0_i32_1 = arith.constant 0 : i32
    return %arg0, %c0_i32, %c0_i32_0 : i32, i32, i32
  }
  func.func @transform_1(%arg0: i32) -> (i32, i32, i32) {
    %c0_i32 = arith.constant 0 : i32
    %c0_i32_0 = arith.constant 0 : i32
    %c0_i32_1 = arith.constant 0 : i32
    return %arg0, %c0_i32, %c0_i32_0 : i32, i32, i32
  }
  func.func @transform_2(%arg0: i32) -> (i32, i32) {
    %c0_i32 = arith.constant 0 : i32
    %c0_i32_0 = arith.constant 0 : i32
    %c0_i32_1 = arith.constant 0 : i32
    return %c0_i32, %c0_i32_0 : i32, i32
  }
  func.func @transform_3(%arg0: i32) -> (i32, i32) {
    %c0_i32 = arith.constant 0 : i32
    %c0_i32_0 = arith.constant 0 : i32
    %c0_i32_1 = arith.constant 0 : i32
    return %c0_i32, %c0_i32_0 : i32, i32
  }
  func.func @transform_4(%arg0: i32) -> (i32, i32, i32) {
    %c0_i32 = arith.constant 0 : i32
    %c0_i32_0 = arith.constant 0 : i32
    %c0_i32_1 = arith.constant 0 : i32
    %c0_i32_2 = arith.constant 0 : i32
    return %c0_i32, %c0_i32_0, %c0_i32_1 : i32, i32, i32
  }
  func.func @transform_5(%arg0: i32) -> (i32, i32, i32) {
    %c0_i32 = arith.constant 0 : i32
    %c0_i32_0 = arith.constant 0 : i32
    %c0_i32_1 = arith.constant 0 : i32
    %c0_i32_2 = arith.constant 0 : i32
    return %c0_i32, %c0_i32_0, %c0_i32_1 : i32, i32, i32
  }
  func.func @transform_6(%arg0: i32) -> (i32, i32, i32) {
    %c0_i32 = arith.constant 0 : i32
    %c0_i32_0 = arith.constant 0 : i32
    %c0_i32_1 = arith.constant 0 : i32
    %c0_i32_2 = arith.constant 0 : i32
    return %c0_i32, %c0_i32_0, %c0_i32_1 : i32, i32, i32
  }
  func.func @transform_7(%arg0: i32) -> (i32, i32, i32) {
    %c0_i32 = arith.constant 0 : i32
    %c0_i32_0 = arith.constant 0 : i32
    %c0_i32_1 = arith.constant 0 : i32
    %c0_i32_2 = arith.constant 0 : i32
    return %c0_i32, %c0_i32_0, %c0_i32_1 : i32, i32, i32
  }
  func.func @transform_8(%arg0: i32) -> (i32, i32, i32) {
    %c0_i32 = arith.constant 0 : i32
    %c0_i32_0 = arith.constant 0 : i32
    %c0_i32_1 = arith.constant 0 : i32
    %c0_i32_2 = arith.constant 0 : i32
    return %c0_i32, %c0_i32_0, %c0_i32_1 : i32, i32, i32
  }
  func.func @transform_9(%arg0: i32) -> (i32, i32, i32) {
    %c0_i32 = arith.constant 0 : i32
    %c0_i32_0 = arith.constant 0 : i32
    %c0_i32_1 = arith.constant 0 : i32
    %c0_i32_2 = arith.constant 0 : i32
    return %c0_i32, %c0_i32_0, %c0_i32_1 : i32, i32, i32
  }
  func.func @transform_10(%arg0: i32) -> (i32, i32) {
    %c0_i32 = arith.constant 0 : i32
    %c0_i32_0 = arith.constant 0 : i32
    %c0_i32_1 = arith.constant 0 : i32
    return %c0_i32, %c0_i32_0 : i32, i32
  }
  func.func @transform_11(%arg0: i32) -> (i32, i32) {
    %c0_i32 = arith.constant 0 : i32
    %c0_i32_0 = arith.constant 0 : i32
    %c0_i32_1 = arith.constant 0 : i32
    return %c0_i32, %c0_i32_0 : i32, i32
  }
  func.func @transform_12(%arg0: i32) -> (i32, i32) {
    %c0_i32 = arith.constant 0 : i32
    %c0_i32_0 = arith.constant 0 : i32
    %c0_i32_1 = arith.constant 0 : i32
    return %c0_i32, %c0_i32_0 : i32, i32
  }
  func.func @transform_13(%arg0: i32) -> (i32, i32, i32) {
    %c0_i32 = arith.constant 0 : i32
    %c0_i32_0 = arith.constant 0 : i32
    %c0_i32_1 = arith.constant 0 : i32
    return %arg0, %c0_i32, %c0_i32_0 : i32, i32, i32
  }
}

</mosaic_0001>

<bundles_post_ra>
// kernel: tpu_custom_call.1
= control target key start
LH: loop header
LB: loop body
LE: loop exit
PB: predicated region body
PF: predicated region fallthrough
CT: control target
= control target key end

     0   :  { %s6568_s0 = inlined_call_operand.vmem [shape: f32[2,16,8], index: 0, kind: input, shape index: {}]   ;;  %s6569_s1 = inlined_call_operand.hbm [shape: f32[2,16,32], index: 1, kind: input, shape index: {}]   ;;  %s6570_s2 = inlined_call_operand.hbm [shape: f32[16,16], index: 2, kind: input, shape index: {}]   ;;  %s6571_s3 = inlined_call_operand.hbm [shape: f32[16,16], index: 3, kind: input, shape index: {}]   ;;  %s6572_s4 = inlined_call_operand.vmem [shape: f32[6,8,32], index: 4, kind: input, shape index: {}]   ;;  %s6573_s5 = inlined_call_operand.hbm [shape: f32[6,32,32], index: 5, kind: input, shape index: {}]   ;;  %s6574_s6 = inlined_call_operand.hbm [shape: f32[6,8,32], index: 6, kind: input, shape index: {}]   ;;  %s6575_s7 = inlined_call_operand.hbm [shape: f32[6,32,32], index: 7, kind: input, shape index: {}]   ;;  %s6576_s8 = inlined_call_operand.hbm [shape: f32[6,8,32], index: 8, kind: input, shape index: {}]   ;;  %s6577_s9 = inlined_call_operand.hbm [shape: f32[6,32,32], index: 9, kind: input, shape index: {}]   ;;  %s6578_s10 = inlined_call_operand.vmem [shape: f32[1,32], index: 10, kind: input, shape index: {}]   ;;  %s6579_s11 = inlined_call_operand.vmem [shape: f32[1,32], index: 11, kind: input, shape index: {}]   ;;  %s6580_s12 = inlined_call_operand.vmem [shape: f32[1,32], index: 12, kind: input, shape index: {}]   ;;  %s6581_s13 = inlined_call_operand.hbm [shape: f32[2,16,32], index: 13, kind: output, shape index: {}]  }
   0x1   :  { %6588 = sst [smem:[#allocation23_spill]] %s6570_s2 }
   0x2   :  { %6589 = sst [smem:[#allocation24_spill]] %s6571_s3 }
   0x3   :  { %6590 = sst [smem:[#allocation25_spill]] %s6573_s5 }
   0x4   :  { %6591 = sst [smem:[#allocation26_spill]] %s6574_s6 }
   0x5   :  { %6592 = sst [smem:[#allocation27_spill]] %s6575_s7 }
   0x6   :  { %6593 = sst [smem:[#allocation28_spill]] %s6576_s8 }
   0x7   :  { %6594 = sst [smem:[#allocation29_spill]] %s6577_s9 }
   0x8   :  { %18 = vsyncpa [#allocation3], 0 }
   0x9   :  { %20 = vsyncpa [#allocation3 + $0x1], 0 }
   0xa   :  { %21 = vsyncpa [#allocation6], 0 }
   0xb   :  { %22 = vsyncpa [#allocation9], 0 }
   0xc   :  { %23 = vsyncpa [#allocation12], 0 }
   0xd   :  { %24 = vsyncpa [#allocation15], 0 }
   0xe   :  { %25 = vsyncpa [#allocation4], 0 }
   0xf   :  { %27 = vsyncpa [#allocation4 + $0x1], 0  ;;  %s5956_s25 = smov 0   ;;  %s5958_s26 = smov 0  }
  0x10   :  { %s5960_s27 = smov 0   ;;  %s5962_s28 = smov 0  }
  0x11 LB: > { %s5873_s29 = smov [#allocation5]   ;;  %s5977_s14 = sadd.s32 4294967295, %s5871_s28   ;;  %s5871_s28 = sphi %s5962_s28, %s6627_s28   ;;  %s5867_s27 = sphi %s5960_s27, %s6626_s27   ;;  %s5863_s26 = sphi %s5958_s26, %s6625_s26   ;;  %s5859_s25 = sphi %s5956_s25, %s6624_s25  }
  0x12   : > { %s359_s30 = sshll.u32 %s5873_s29, 4  ;;  %p4715_p0 = scmp.ge.s32.totalorder %s5871_s28, 1  ;;  %s360_s30 = int_to_ptr.vmem [resolvable:$true] %s359_s30 }
  0x13   : > { %p6584_p1 = scmp.eq.s32.totalorder %s5977_s14, 0  ;;  %p347_p2 = scmp.lt.s32.totalorder %s5871_s28, 3 }
  0x14   : > { %s5874_s16 = smov [#allocation8]   ;;  %s5875_s19 = smov [#allocation11]  }
  0x15   : > { %p5982_p3 = pnand %p4715_p0, %p347_p2  ;;  %s388_s17 = sshll.u32 %s5874_s16, 4  ;;  %s5995_s17 = int_to_ptr.vmem [resolvable:$true] %s388_s17 }
  0x16   : > { %s414_s20 = sshll.u32 %s5875_s19, 4  ;;  %s5592_s22 = scalar_lea.vmem %s360_s30, 256  ;;  %s5997_s20 = int_to_ptr.vmem [resolvable:$true] %s414_s20 }
  0x17   : > { %s6595_s15 = scalar_select %p5982_p3, 1, 0 }
  0x18   : > { %p5469_p5 = pneg %p5982_p3  ;;  %p5593_p8 = scmp.ne.s32.totalorder %s360_s30, %s5592_s22 }
  0x19   : > { %p5600_p11 = scmp.lt.s32.totalorder %s360_s30, %s360_s30  ;;  %p5601_p12 = scmp.lt.s32.totalorder %s5592_s22, %s5592_s22 }
  0x1a   : > { %p5991_p6 = pnand %p5469_p5, %p6584_p1 }
  0x1b   : > { %p5602_p13 = por %p5601_p12, %p5600_p11 }
  0x1c   : > { %p6001_p7 = pneg %p5991_p6 }
  0x1e   : > { %p5595_p9 = pnand %p5593_p8, %p6001_p7 }
  0x20   : > { %p5596_p10 = pneg %p5595_p9 }
  0x22   : > { %p5603_p0 = pnand %p5602_p13, %p5596_p10 }
  0x24   : > { %5606 = shalt.err (!%p5603_p0)
}
  0x25   : > { %s6582_s23 = smov 128   ;;  %s6583_s24 = smov 8  }
  0x26   : > { %s6598_s2 = sld [smem:[#allocation23_spill]]  ;;  %s5618_s19 = scalar_lea.vmem %s5995_s17, 3072 }
  0x27   : > { %p5619_p2 = scmp.ne.s32.totalorder %s5995_s17, %s5618_s19  ;;  %p5626_p9 = scmp.lt.s32.totalorder %s5995_s17, %s5995_s17 }
  0x28   : > { %p5627_p10 = scmp.lt.s32.totalorder %s5618_s19, %s5618_s19 }
  0x29   : > { %p5621_p5 = pnand %p5619_p2, %p6001_p7 }
  0x2a   : > { %p5628_p11 = por %p5627_p10, %p5626_p9 }
  0x2b   : > { %p5622_p8 = pneg %p5621_p5 }
  0x2c   : > { %5472 = dma.hbm_to_vmem [thread:$0]  (!%p5991_p6), %s6598_s2, 256, %s360_s30, [#allocation6], %s6582_s23, %s6582_s23, %s6583_s24  }
  0x2d   : > { %p5629_p12 = pnand %p5628_p11, %p5622_p8 }
  0x2f   : > { %5632 = shalt.err (!%p5629_p12)
}
  0x30   : > { %s6599_s5 = sld [smem:[#allocation25_spill]]  ;;  %s5644_s30 = scalar_lea.vmem %s5997_s20, 3072 }
  0x31   : > { %p5645_p13 = scmp.ne.s32.totalorder %s5997_s20, %s5644_s30  ;;  %p5652_p5 = scmp.lt.s32.totalorder %s5997_s20, %s5997_s20 }
  0x32   : > { %p5653_p8 = scmp.lt.s32.totalorder %s5644_s30, %s5644_s30 }
  0x33   : > { %p5647_p0 = pnand %p5645_p13, %p6001_p7 }
  0x34   : > { %p5654_p9 = por %p5653_p8, %p5652_p5 }
  0x35   : > { %p5648_p2 = pneg %p5647_p0 }
  0x36   : > { %5478 = dma.hbm_to_vmem [thread:$0]  (!%p5991_p6), %s6599_s5, 3072, %s5995_s17, [#allocation9], %s6582_s23, %s6582_s23, %s6583_s24  }
  0x37   : > { %p5655_p10 = pnand %p5654_p9, %p5648_p2 }
  0x39   : > { %5658 = shalt.err (!%p5655_p10)
}
  0x3a   : > { %s6600_s7 = sld [smem:[#allocation27_spill]]  ;;  %s5878_s17 = smov [#allocation7]  }
  0x3b   : > { %s372_s22 = sshll.u32 %s5878_s17, 4  ;;  %s5879_s29 = smov [#allocation10]   ;;  %s373_s22 = int_to_ptr.vmem [resolvable:$true] %s372_s22 }
  0x3c   : > { %s401_s2 = sshll.u32 %s5879_s29, 4  ;;  %s5670_s30 = scalar_lea.vmem %s373_s22, 256  ;;  %s402_s2 = int_to_ptr.vmem [resolvable:$true] %s401_s2 }
  0x3d   : > { %p5671_p11 = scmp.ne.s32.totalorder %s373_s22, %s5670_s30  ;;  %p5678_p0 = scmp.lt.s32.totalorder %s373_s22, %s373_s22 }
  0x3e   : > { %p5679_p2 = scmp.lt.s32.totalorder %s5670_s30, %s5670_s30 }
  0x3f   : > { %p5673_p12 = pnand %p5671_p11, %p6001_p7 }
  0x40   : > { %5484 = dma.hbm_to_vmem [thread:$0]  (!%p5991_p6), %s6600_s7, 3072, %s5997_s20, [#allocation12], %s6582_s23, %s6582_s23, %s6583_s24  }
  0x41   : > { %p5674_p13 = pneg %p5673_p12  ;;  %p5680_p5 = por %p5679_p2, %p5678_p0 }
  0x43   : > { %p5681_p8 = pnand %p5680_p5, %p5674_p13 }
  0x45   : > { %5684 = shalt.err (!%p5681_p8)
}
  0x46   : > { %s6601_s3 = sld [smem:[#allocation24_spill]]  ;;  %s5696_s19 = scalar_lea.vmem %s402_s2, 768 }
  0x47   : > { %p5697_p9 = scmp.ne.s32.totalorder %s402_s2, %s5696_s19  ;;  %p5704_p12 = scmp.lt.s32.totalorder %s402_s2, %s402_s2 }
  0x48   : > { %p5705_p0 = scmp.lt.s32.totalorder %s5696_s19, %s5696_s19 }
  0x49   : > { %p5699_p10 = pnand %p5697_p9, %p6001_p7 }
  0x4a   : > { %p5706_p13 = por %p5705_p0, %p5704_p12 }
  0x4b   : > { %p5700_p11 = pneg %p5699_p10 }
  0x4c   : > { %5475 = dma.hbm_to_vmem [thread:$0]  (!%p5991_p6), %s6601_s3, 256, %s373_s22, [#allocation6], %s6582_s23, %s6582_s23, %s6583_s24  }
  0x4d   : > { %p5707_p2 = pnand %p5706_p13, %p5700_p11 }
  0x4f   : > { %5710 = shalt.err (!%p5707_p2)
}
  0x50   : > { %s6602_s6 = sld [smem:[#allocation26_spill]]  ;;  %s5880_s22 = smov [#allocation13]  }
  0x51   : > { %s427_s30 = sshll.u32 %s5880_s22, 4  ;;  %s5881_s20 = smov [#allocation14]   ;;  %s428_s30 = int_to_ptr.vmem [resolvable:$true] %s427_s30 }
  0x52   : > { %s440_s16 = sshll.u32 %s5881_s20, 4  ;;  %s5722_s3 = scalar_lea.vmem %s428_s30, 768  ;;  %s441_s16 = int_to_ptr.vmem [resolvable:$true] %s440_s16 }
  0x53   : > { %p5723_p5 = scmp.ne.s32.totalorder %s428_s30, %s5722_s3  ;;  %p5730_p10 = scmp.lt.s32.totalorder %s428_s30, %s428_s30 }
  0x54   : > { %p5731_p11 = scmp.lt.s32.totalorder %s5722_s3, %s5722_s3 }
  0x55   : > { %p5725_p8 = pnand %p5723_p5, %p6001_p7 }
  0x56   : > { %5481 = dma.hbm_to_vmem [thread:$0]  (!%p5991_p6), %s6602_s6, 768, %s402_s2, [#allocation9], %s6582_s23, %s6582_s23, %s6583_s24  }
  0x57   : > { %p5726_p9 = pneg %p5725_p8  ;;  %p5732_p12 = por %p5731_p11, %p5730_p10 }
  0x59   : > { %p5733_p0 = pnand %p5732_p12, %p5726_p9 }
  0x5b   : > { %5736 = shalt.err (!%p5733_p0)
}
  0x5c   : > { %s6603_s8 = sld [smem:[#allocation28_spill]]  ;;  %s5748_s17 = scalar_lea.vmem %s441_s16, 3072 }
  0x5d   : > { %p5749_p13 = scmp.ne.s32.totalorder %s441_s16, %s5748_s17  ;;  %p5756_p8 = scmp.lt.s32.totalorder %s441_s16, %s441_s16 }
  0x5e   : > { %p5757_p10 = scmp.lt.s32.totalorder %s5748_s17, %s5748_s17 }
  0x5f   : > { %p5751_p2 = pnand %p5749_p13, %p6001_p7 }
  0x60   : > { %p5758_p9 = por %p5757_p10, %p5756_p8 }
  0x61   : > { %p5752_p5 = pneg %p5751_p2 }
  0x62   : > { %5487 = dma.hbm_to_vmem [thread:$0]  (!%p5991_p6), %s6603_s8, 768, %s428_s30, [#allocation12], %s6582_s23, %s6582_s23, %s6583_s24  }
  0x63   : > { %p5759_p11 = pnand %p5758_p9, %p5752_p5 }
  0x65   : > { %5762 = shalt.err (!%p5759_p11)
}
  0x66   : > { %s6604_s9 = sld [smem:[#allocation29_spill]]  ;;  %s4714_s18 = sadd.s32 4294967294, %s5871_s28  }
  0x67   : > { %s6087_s21 = sadd.s32 1, %s5871_s28   ;;  %s66_s22 = sadd.s32 1, %s5867_s27 }
  0x68   : > { %s63_s30 = ssub.s32 %s5871_s28, %s6087_s21  ;;  %p73_p7 = scmp.ne.s32.totalorder %s5867_s27, %s5863_s26 }
  0x69   : > { %p64_p12 = scmp.eq.s32.totalorder %s63_s30, 0  ;;  %p74_p0 = scmp.eq.s32.totalorder %s5871_s28, 0 }
  0x6a   : > { %p79_p13 = scmp.ne.s32.totalorder %s5863_s26, %s5859_s25  ;;  %p334_p2 = scmp.eq.s32.totalorder %s5977_s14, 1 }
  0x6b   : > { %s6099_s20 = scalar_select %p64_p12, %s5867_s27, %s66_s22  }
  0x6c   : > { %5490 = dma.hbm_to_vmem [thread:$0]  (!%p5991_p6), %s6604_s9, 3072, %s441_s16, [#allocation15], %s6582_s23, %s6582_s23, %s6583_s24  }
  0x6d   : > { %p75_p5 = por %p74_p0, %p73_p7  ;;  %p6103_p8 = por %p6584_p1, %p79_p13 }
  0x6e   : > { %p6107_p6 = por %p334_p2, %p73_p7  ;;  %p340_p10 = scmp.eq.s32.totalorder %s4714_s18, 1 }
  0x6f   : > { %s6605_s2 = scalar_select %p6103_p8, 1, 0 }
  0x70   : > { %s6606_s16 = scalar_select %p6107_p6, 1, 0 }
  0x71   : > { %p5506_p9 = scmp.lt.s32.totalorder %s5871_s28, 2  ;;  %s471_s19 = sand.u32 1, %s5867_s27  }
  0x72   : > { %p6113_p11 = por %p340_p10, %p79_p13  ;;  %s4724_s3 = sshll.u32 %s471_s19, 4 }
  0x73   : > { %s4852_s29 = sshll.u32 %s5871_s28, 8  ;;  %s475_s24 = scalar_lea.vmem [#allocation2], %s4724_s3 }
  0x74   : > { %s6607_s17 = scalar_select %p6113_p11, 1, 0 }
  0x75   : > { %s6121_s23 = scalar_lea.hbm %s6569_s1, %s4852_s29  ;;  %s482_s5 = sshll.u32 %s475_s24, 4  ;;  %s6127_s5 = int_to_ptr.vmem [resolvable:$true] %s482_s5 }
  0x76   : > { %p6123_p7 = pnand %p5506_p9, %p75_p5  ;;  %s6129_s6 = scalar_lea.sflag [#allocation3], %s471_s19 }
  0x77   : > { %s5763_s7 = scalar_lea.hbm %s6121_s23, 256  ;;  %s5768_s3 = scalar_lea.hbm %s6569_s1, 512 }
  0x78   : > { %p5764_p12 = scmp.ne.s32.totalorder %s6121_s23, %s5763_s7  ;;  %p5765_p0 = pneg %p6123_p7 }
  0x79   : > { %p5769_p5 = scmp.lt.s32.totalorder %s6121_s23, %s6569_s1  ;;  %p5770_p10 = scmp.lt.s32.totalorder %s5768_s3, %s5763_s7 }
  0x7a   : > { %p5766_p13 = pnand %p5765_p0, %p5764_p12 }
  0x7b   : > { %p5771_p9 = por %p5770_p10, %p5769_p5 }
  0x7c   : > { %p5767_p2 = pneg %p5766_p13 }
  0x7e   : > { %p5772_p4 = pnand %p5771_p9, %p5767_p2 }
  0x80   : > { %5775 = shalt.err (!%p5772_p4)
}
  0x81   : > { %s5776_s19 = scalar_lea.vmem %s6127_s5, 256  ;;  %s5882_s8 = smov [#allocation2]  }
  0x82   : > { %p5777_p1 = scmp.ne.s32.totalorder %s6127_s5, %s5776_s19  ;;  %s5781_s9 = sshll.u32 %s5882_s8, 4  ;;  %s5782_s9 = int_to_ptr.vmem [resolvable:$false] %s5781_s9 }
  0x83   : > { %s5783_s29 = scalar_lea.vmem %s5782_s9, 512  ;;  %p5784_p13 = scmp.lt.s32.totalorder %s6127_s5, %s5782_s9 }
  0x84   : > { %p5779_p11 = pnand %p5777_p1, %p5765_p0  ;;  %p5785_p6 = scmp.lt.s32.totalorder %s5783_s29, %s5776_s19 }
  0x86   : > { %p5780_p12 = pneg %p5779_p11  ;;  %p5786_p8 = por %p5785_p6, %p5784_p13 }
  0x88   : > { %p5787_p3 = pnand %p5786_p8, %p5780_p12 }
  0x8a   : > { %5790 = shalt.err (!%p5787_p3)
}
  0x8b   : > { %s6609_s7 = smov 8   ;;  %s6610_s22 = smov 128  }
  0x8c   : > { %5494 = dma.hbm_to_vmem [thread:$0]  (!%p6123_p7), %s6121_s23, 256, %s6127_s5, %s6129_s6, %s6610_s22, %s6610_s22, %s6609_s7  }
  0x8d   : > { %p6611_p1 = scmp.ne.s32.totalorder %s6595_s15, 0 }
  0x8e   : > { %s6156_s8 = sand.u32 (!%p6611_p1), 1, %s5863_s26   ;;  %p6612_p3 = scmp.ne.s32.totalorder (!%p6611_p1), %s6605_s2, 0 }
  0x8f   : > { %494 = sbr.rel (%p6611_p1) target bundleno = 2029 (0x7ed), region = 72  ;;  %s4728_s9 = sshll.u32 (!%p6611_p1), %s6156_s8, 4 }
  0x90   : > { %s497_s3 = scalar_lea.sflag (!%p6611_p1), [#allocation3], %s6156_s8  ;;  %s6162_s18 = scalar_lea.vmem (!%p6611_p1), [#allocation2], %s4728_s9 }
  0x94   : > { %5834 = dma.done.wait (%p6612_p3), %s497_s3, 256  }
  0x95   : > { %5836 = vsyncadd (%p6612_p3), %s497_s3, 4294967040  ;;  %p6613_p4 = scmp.eq.s32.totalorder %s5977_s14, 0 }
  0x97   : > { %5838 = dma.done.wait (%p6613_p4), [#allocation6], 512   ;;  %p6614_p8 = pmov %p6613_p4 }
  0x98   : > { %p6615_p6 = pmov %p6613_p4 }
  0x99   : > { %5840 = vsyncadd (%p6614_p8), [#allocation6], 4294966784 }
  0x9a   : > { %5842 = dma.done.wait (%p6615_p6), [#allocation9], 3840   ;;  %p6616_p11 = pmov %p6613_p4 }
  0x9b   : > { %p6617_p7 = pmov %p6613_p4 }
  0x9c   : > { %5844 = vsyncadd (%p6616_p11), [#allocation9], 4294963456 }
  0x9d   : > { %5846 = dma.done.wait (%p6617_p7), [#allocation12], 3840   ;;  %p6618_p0 = pmov %p6613_p4 }
  0x9f   : > { %5848 = vsyncadd (%p6618_p0), [#allocation12], 4294963456  ;;  %p6619_p2 = pmov %p6618_p0 }
  0xa0   : > { %p6620_p5 = pmov %p6618_p0 }
  0xa1   : > { %5850 = dma.done.wait (%p6619_p2), [#allocation15], 3072  }
  0xa2   : > { %5852 = vsyncadd (%p6620_p5), [#allocation15], 4294964224  ;;  %p576_p10 = scmp.lt.s32.totalorder %s5977_s14, 1  ;;  %vm589_vm0 = vcmask 130048   ;;  %v6193_v2 = vld [vmem:[#allocation5] sm:$0xff]  ;;  %v6199_v3 = vld [vmem:[#allocation5 + $0x8] sm:$0xff] }
  0xa3   : > { %5069 = vmatprep.mubr.msk.f32.mxu1 %vm589_vm0, %v6193_v2  ;;  %v6202_v4 = vld [vmem:[%s6162_s18 + $0x8] sm:$0xff]  ;;  %5083 = vmatprep.mubr.msk.f32.mxu0 %vm589_vm0, %v6193_v2  ;;  %v6209_v5 = vld [vmem:[%s6162_s18] sm:$0xff]  ;;  %vm1219_vm1 = vcmask 64512   ;;  %vm1307_vm2 = vcmask 261120   ;;  %s4854_s3 = sshll.u32 %s5977_s14, 8  ;;  %p6621_p12 = scmp.ne.s32.totalorder %s6606_s16, 0 }
  0xa4   : > { %s577_s5 = scalar_select %p576_p10, %s5977_s14, 1  ;;  %v6240_v10 = vld [vmem:[#allocation7] sm:$0xff]  ;;  %v6244_v11 = vld [vmem:[#allocation7 + $0x8] sm:$0xff]  ;;  %v1218_v18 = vld [vmem:[%s6572_s4] sm:$0xff] }
  0xa5   : > { %v1391_v20 = vld [vmem:[#allocation10] sm:$0xff]  ;;  %v1306_v22 = vld [vmem:[#allocation8 + $0x18] sm:$0xff]  ;;  %v1305_v23 = vld [vmem:[#allocation8 + $0x10] sm:$0xff]  ;;  %s4549_s14 = scalar_lea.sflag [#allocation4], %s6156_s8 }
  0xa6   : > { %s4853_s6 = sshll.u32 %s577_s5, 4  ;;  %v1472_v24 = vld [vmem:[#allocation11 + $0x18] sm:$0xff]  ;;  %v1471_v26 = vld [vmem:[#allocation11 + $0x10] sm:$0xff]  ;;  %v1470_v28 = vld [vmem:[#allocation11 + $0x8] sm:$0xff]  ;;  %s575_s5 = scalar_lea.vmem [#allocation16], %s4728_s9 }
  0xa7   : > { %s580_s2 = scalar_lea.vmem %s6568_s0, %s4853_s6  ;;  %v1304_v25 = vld [vmem:[#allocation8 + $0x8] sm:$0xff]  ;;  %v1303_v27 = vld [vmem:[#allocation8] sm:$0xff]  ;;  %v1469_v29 = vld [vmem:[#allocation11] sm:$0xff]  ;;  %s4562_s6 = sshll.u32 %s575_s5, 4  ;;  %s6523_s6 = int_to_ptr.vmem [resolvable:$true] %s4562_s6 }
  0xa8   : > { %v6189_v0 = vld [vmem:[%s580_s2 + $0x8] sm:$0xff]  ;;  %v6191_v1 = vld [vmem:[%s580_s2] sm:$0xff]  ;;  %v1639_v31 = vld [vmem:[#allocation8 + $0x38] sm:$0xff]  ;;  %s6521_s2 = scalar_lea.hbm %s6581_s13, %s4854_s3  ;;  %s5791_s9 = scalar_lea.vmem %s6523_s6, 256 }
  0xa9   : > { %5065 = vmatprep.subr.mxu1 %v6189_v0  ;;  %v4765_v30 = vld [vmem:[%s6572_s4 + $0x8] sm:$0xff]  ;;  %v1638_v33 = vld [vmem:[#allocation8 + $0x30] sm:$0xff]  ;;  %v1805_v36 = vld [vmem:[#allocation11 + $0x30] sm:$0xff]  ;;  %p5792_p9 = scmp.ne.s32.totalorder %s6523_s6, %s5791_s9 }
  0xaa   : > { %5066 = vmatpush3.msra.mxu1 %v6189_v0  ;;  %v1724_v32 = vld [vmem:[#allocation10 + $0x8] sm:$0xff]  ;;  %v1636_v37 = vld [vmem:[#allocation8 + $0x20] sm:$0xff]  ;;  %v1804_v38 = vld [vmem:[#allocation11 + $0x28] sm:$0xff] }
  0xab   : > { %5067 = vmatprep.subr.mxu1 %v6191_v1  ;;  %v1806_v34 = vld [vmem:[#allocation11 + $0x38] sm:$0xff]  ;;  %v4774_v39 = vld [vmem:[%s6572_s4 + $0x10] sm:$0xff]  ;;  %v1973_v41 = vld [vmem:[#allocation8 + $0x58] sm:$0xff]  ;;  %p5793_p13 = pnand %p5792_p9, %p6621_p12 }
  0xac   : > { %5068 = vmatpush3.msra.mxu1 %v6191_v1  ;;  %v1637_v35 = vld [vmem:[#allocation8 + $0x28] sm:$0xff]  ;;  %v1803_v40 = vld [vmem:[#allocation11 + $0x20] sm:$0xff]  ;;  %v2139_v46 = vld [vmem:[#allocation11 + $0x50] sm:$0xff] }
  0xad   : > { %5070 = vmatmul.mubr.msk.f32.vlgmr.msra.gmra.mxu1 %vm589_vm0, %v6199_v3  ;;  %5072 = vmatprep.subr.mxu1 %v6202_v4  ;;  %v2058_v42 = vld [vmem:[#allocation10 + $0x10] sm:$0xff]  ;;  %v2140_v44 = vld [vmem:[#allocation11 + $0x58] sm:$0xff]  ;;  %v1970_v47 = vld [vmem:[#allocation8 + $0x40] sm:$0xff]  ;;  %p5794_p1 = pneg %p5793_p13 }
  0xae   : > { %5073 = vmatpush3.msra.mxu1 %v6202_v4  ;;  %5076 = vmatprep.mubr.msk.f32.mxu1 %vm589_vm0, %v6193_v2  ;;  %v1972_v43 = vld [vmem:[#allocation8 + $0x50] sm:$0xff]  ;;  %v1971_v45 = vld [vmem:[#allocation8 + $0x48] sm:$0xff]  ;;  %v2138_v48 = vld [vmem:[#allocation11 + $0x48] sm:$0xff] }
  0xaf   : > { %5074 = vmatprep.subr.mxu1 %v6209_v5  ;;  %v4783_v49 = vld [vmem:[%s6572_s4 + $0x18] sm:$0xff]  ;;  %v2137_v50 = vld [vmem:[#allocation11 + $0x40] sm:$0xff]  ;;  %v2462_v54 = vld [vmem:[#allocation11 + $0x78] sm:$0xff] }
  0xb0   : > { %5075 = vmatpush3.msra.mxu1 %v6209_v5  ;;  %v2301_v51 = vld [vmem:[#allocation8 + $0x78] sm:$0xff]  ;;  %v2300_v53 = vld [vmem:[#allocation8 + $0x70] sm:$0xff]  ;;  %v2299_v55 = vld [vmem:[#allocation8 + $0x68] sm:$0xff] }
  0xb1   : > { %5077 = vmatmul.mubr.msk.f32.vlgmr.msra.gmra.mxu1 %vm589_vm0, %v6199_v3  ;;  %v2380_v52 = vld [vmem:[#allocation10 + $0x18] sm:$0xff]  ;;  %v2461_v56 = vld [vmem:[#allocation11 + $0x70] sm:$0xff]  ;;  %v2459_v59 = vld [vmem:[#allocation11 + $0x60] sm:$0xff] }
  0xb2   : > { %5090 = vmatprep.mubr.msk.f32.mxu1 %vm589_vm0, %v6193_v2  ;;  %v2298_v57 = vld [vmem:[#allocation8 + $0x60] sm:$0xff]  ;;  %v2460_v58 = vld [vmem:[#allocation11 + $0x68] sm:$0xff]  ;;  %v2628_v63 = vld [vmem:[#allocation8 + $0x90] sm:$0xff] }
  0xb3   : > { %v4792_v60 = vld [vmem:[%s6572_s4 + $0x20] sm:$0xff]  ;;  %v2629_v61 = vld [vmem:[#allocation8 + $0x98] sm:$0xff] }
  0xb4   : > { %v2714_v62 = vld [vmem:[#allocation10 + $0x20] sm:$0xff] }
 0x16d   : > { %v6223_v6 = vpop.f32.mrf.mxu1 }
 0x16e   : > { %5079 = vmatprep.subr.mxu0 %v6223_v6 }
 0x16f   : > { %v6226_v7 = vpop.f32.mrf.mxu1  ;;  %5080 = vmatpush3.msra.mxu0 %v6223_v6 }
 0x170   : > { %5081 = vmatprep.subr.mxu0 %v6226_v7 }
 0x171   : > { %v6230_v8 = vpop.f32.mrf.mxu1  ;;  %5082 = vmatpush3.msra.mxu0 %v6226_v7 }
 0x172   : > { %5084 = vmatmul.mubr.msk.f32.vlgmr.msra.gmra.mxu0 %vm589_vm0, %v6199_v3  ;;  %5086 = vmatprep.subr.mxu1 %v6230_v8 }
 0x173   : > { %5093 = vmatprep.subr.mxu0 %v6189_v0  ;;  %v6237_v9 = vpop.f32.mrf.mxu1  ;;  %5087 = vmatpush3.msra.mxu1 %v6230_v8 }
 0x174   : > { %5094 = vmatpush3.msra.mxu0 %v6189_v0  ;;  %5088 = vmatprep.subr.mxu1 %v6237_v9 }
 0x175   : > { %5095 = vmatprep.subr.mxu0 %v6191_v1  ;;  %5089 = vmatpush3.msra.mxu1 %v6237_v9 }
 0x176   : > { %5096 = vmatpush3.msra.mxu0 %v6191_v1  ;;  %5097 = vmatprep.mubr.msk.f32.mxu0 %vm589_vm0, %v6240_v10 }
 0x177   : > { %5091 = vmatmul.mubr.msk.f32.vlgmr.msra.gmra.mxu1 %vm589_vm0, %v6199_v3  ;;  %5098 = vmatmul.mubr.msk.f32.vlgmr.msra.gmra.mxu0 %vm589_vm0, %v6244_v11 }
 0x178   : > { %5100 = vmatprep.subr.mxu1 %v6202_v4  ;;  %5104 = vmatprep.mubr.msk.f32.mxu1 %vm589_vm0, %v6240_v10 }
 0x179   : > { %5101 = vmatpush3.msra.mxu1 %v6202_v4  ;;  %5111 = vmatprep.mubr.msk.f32.mxu0 %vm589_vm0, %v6240_v10 }
 0x17a   : > { %5102 = vmatprep.subr.mxu1 %v6209_v5 }
 0x17b   : > { %5103 = vmatpush3.msra.mxu1 %v6209_v5 }
 0x17c   : > { %5105 = vmatmul.mubr.msk.f32.vlgmr.msra.gmra.mxu1 %vm589_vm0, %v6244_v11 }
 0x17d   : > { %5118 = vmatprep.mubr.msk.f32.mxu1 %vm589_vm0, %v6240_v10 }
 0x232   : > { %v6267_v12 = vpop.f32.mrf.mxu0 }
 0x234   : > { %v6269_v13 = vpop.f32.mrf.mxu0 }
 0x237   : > { %v6271_v14 = vpop.f32.mrf.mxu1  ;;  %v6273_v15 = vpop.f32.mrf.mxu0 }
 0x238   : > { %5107 = vmatprep.subr.mxu0 %v6273_v15 }
 0x239   : > { %v6276_v16 = vpop.f32.mrf.mxu1  ;;  %v6278_v17 = vpop.f32.mrf.mxu0  ;;  %5108 = vmatpush3.msra.mxu0 %v6273_v15 }
 0x23a   : > { %5109 = vmatprep.subr.mxu0 %v6278_v17 }
 0x23b   : > { %5110 = vmatpush3.msra.mxu0 %v6278_v17 }
 0x23c   : > { %v6286_v19 = vpop.f32.mrf.mxu1  ;;  %5112 = vmatmul.mubr.msk.f32.vlgmr.msra.gmra.mxu0 %vm589_vm0, %v6244_v11  ;;  %5121 = vmatprep.subr.mxu0 %v1218_v18 }
 0x23d   : > { %5114 = vmatprep.subr.mxu1 %v6286_v19  ;;  %5122 = vmatpush3.msra.mxu0 %v1218_v18  ;;  %v2794_v18 = vld [vmem:[#allocation11 + $0x88] sm:$0xff] }
 0x23e   : > { %v6291_v21 = vpop.f32.mrf.mxu1  ;;  %5115 = vmatpush3.msra.mxu1 %v6286_v19  ;;  %5123 = vmatprep.mubr.msk.f32.mxu0 %vm1219_vm1, %v6191_v1 }
 0x23f   : > { %5116 = vmatprep.subr.mxu1 %v6291_v21  ;;  %5137 = vmatprep.subr.mxu0 %v1391_v20 }
 0x240   : > { %5117 = vmatpush3.msra.mxu1 %v6291_v21  ;;  %5124 = vmatmul.mubr.msk.f32.vlgmr.msra.gmra.mxu0 %vm1219_vm1, %v6189_v0 }
 0x241   : > { %5126 = vmatprep.subr.mxu1 %v1306_v22  ;;  %5119 = vmatmul.mubr.msk.f32.vlgmr.msra.gmra.mxu1 %vm589_vm0, %v6244_v11 }
 0x242   : > { %5127 = vmatpush3.msra.mxu1 %v1306_v22  ;;  %5138 = vmatpush3.msra.mxu0 %v1391_v20  ;;  %v4801_v20 = vld [vmem:[%s6572_s4 + $0x28] sm:$0xff]  ;;  %v2793_v22 = vld [vmem:[#allocation11 + $0x80] sm:$0xff] }
 0x243   : > { %5128 = vmatprep.subr.mxu1 %v1305_v23  ;;  %5139 = vmatprep.mubr.msk.f32.mxu0 %vm1219_vm1, %v6191_v1 }
 0x244   : > { %5129 = vmatpush3.msra.mxu1 %v1305_v23  ;;  %5142 = vmatprep.subr.mxu0 %v1472_v24  ;;  %v2963_v23 = vld [vmem:[#allocation8 + $0xb8] sm:$0xff] }
 0x245   : > { %5130 = vmatprep.subr.mxu1 %v1304_v25  ;;  %5140 = vmatmul.mubr.msk.f32.vlgmr.msra.gmra.mxu0 %vm1219_vm1, %v6189_v0 }
 0x246   : > { %5143 = vmatpush3.msra.mxu0 %v1472_v24  ;;  %5131 = vmatpush3.msra.mxu1 %v1304_v25  ;;  %v3048_v24 = vld [vmem:[#allocation10 + $0x28] sm:$0xff] }
 0x247   : > { %5144 = vmatprep.subr.mxu0 %v1471_v26  ;;  %5132 = vmatprep.subr.mxu1 %v1303_v27 }
 0x248   : > { %5145 = vmatpush3.msra.mxu0 %v1471_v26  ;;  %5133 = vmatpush3.msra.mxu1 %v1303_v27  ;;  %v2962_v27 = vld [vmem:[#allocation8 + $0xb0] sm:$0xff] }
 0x249   : > { %5134 = vmatprep.mubr.msk.f32.mxu1 %vm1307_vm2, %v6209_v5  ;;  %5146 = vmatprep.subr.mxu0 %v1470_v28 }
 0x24a   : > { %5135 = vmatmul.mubr.msk.f32.vlgmr.msra.gmra.mxu1 %vm1307_vm2, %v6202_v4  ;;  %5147 = vmatpush3.msra.mxu0 %v1470_v28  ;;  %v3129_v28 = vld [vmem:[#allocation11 + $0xb0] sm:$0xff] }
 0x24b   : > { %5148 = vmatprep.subr.mxu0 %v1469_v29  ;;  %5153 = vmatprep.subr.mxu1 %v4765_v30 }
 0x24c   : > { %5155 = vmatprep.mubr.msk.f32.mxu1 %vm1219_vm1, %v6226_v7  ;;  %5149 = vmatpush3.msra.mxu0 %v1469_v29  ;;  %v2961_v29 = vld [vmem:[#allocation8 + $0xa8] sm:$0xff] }
 0x24d   : > { %5150 = vmatprep.mubr.msk.f32.mxu0 %vm1307_vm2, %v6209_v5  ;;  %5154 = vmatpush3.msra.mxu1 %v4765_v30  ;;  %v3128_v30 = vld [vmem:[#allocation11 + $0xa8] sm:$0xff] }
 0x24e   : > { %5151 = vmatmul.mubr.msk.f32.vlgmr.msra.gmra.mxu0 %vm1307_vm2, %v6202_v4  ;;  %5158 = vmatprep.subr.mxu1 %v1639_v31 }
 0x24f   : > { %5156 = vmatmul.mubr.msk.f32.vlgmr.msra.gmra.mxu1 %vm1219_vm1, %v6223_v6  ;;  %5169 = vmatprep.subr.mxu0 %v1724_v32 }
 0x250   : > { %5159 = vmatpush3.msra.mxu1 %v1639_v31  ;;  %5171 = vmatprep.mubr.msk.f32.mxu0 %vm1219_vm1, %v6226_v7 }
 0x251   : > { %5160 = vmatprep.subr.mxu1 %v1638_v33  ;;  %5166 = vmatprep.mubr.msk.f32.mxu1 %vm1307_vm2, %v6237_v9 }
 0x252   : > { %5170 = vmatpush3.msra.mxu0 %v1724_v32  ;;  %5161 = vmatpush3.msra.mxu1 %v1638_v33  ;;  %v4755_v32 = vld [vmem:[%s6578_s10] ss:$0 sm:$0xff] }
 0x253   : > { %5174 = vmatprep.subr.mxu0 %v1806_v34  ;;  %5162 = vmatprep.subr.mxu1 %v1637_v35 }
 0x254   : > { %5172 = vmatmul.mubr.msk.f32.vlgmr.msra.gmra.mxu0 %vm1219_vm1, %v6223_v6  ;;  %5163 = vmatpush3.msra.mxu1 %v1637_v35  ;;  %v3127_v35 = vld [vmem:[#allocation11 + $0xa0] sm:$0xff] }
 0x255   : > { %5175 = vmatpush3.msra.mxu0 %v1806_v34  ;;  %5182 = vmatprep.mubr.msk.f32.mxu0 %vm1307_vm2, %v6237_v9  ;;  %v2627_v9 = vld [vmem:[#allocation8 + $0x88] sm:$0xff]  ;;  %v2960_v34 = vld [vmem:[#allocation8 + $0xa0] sm:$0xff] }
 0x256   : > { %5176 = vmatprep.subr.mxu0 %v1805_v36  ;;  %5164 = vmatprep.subr.mxu1 %v1636_v37 }
 0x257   : > { %5177 = vmatpush3.msra.mxu0 %v1805_v36  ;;  %5165 = vmatpush3.msra.mxu1 %v1636_v37 }
 0x258   : > { %5178 = vmatprep.subr.mxu0 %v1804_v38  ;;  %5167 = vmatmul.mubr.msk.f32.vlgmr.msra.gmra.mxu1 %vm1307_vm2, %v6230_v8 }
 0x259   : > { %5179 = vmatpush3.msra.mxu0 %v1804_v38  ;;  %5185 = vmatprep.subr.mxu1 %v4774_v39 }
 0x25a   : > { %5180 = vmatprep.subr.mxu0 %v1803_v40  ;;  %5187 = vmatprep.mubr.msk.f32.mxu1 %vm1219_vm1, %v6269_v13 }
 0x25b   : > { %5181 = vmatpush3.msra.mxu0 %v1803_v40  ;;  %5186 = vmatpush3.msra.mxu1 %v4774_v39 }
 0x25c   : > { %5183 = vmatmul.mubr.msk.f32.vlgmr.msra.gmra.mxu0 %vm1307_vm2, %v6230_v8  ;;  %5190 = vmatprep.subr.mxu1 %v1973_v41  ;;  %v2796_v8 = vld [vmem:[#allocation11 + $0x98] sm:$0xff] }
 0x25d   : > { %5188 = vmatmul.mubr.msk.f32.vlgmr.msra.gmra.mxu1 %vm1219_vm1, %v6267_v12  ;;  %5201 = vmatprep.subr.mxu0 %v2058_v42 }
 0x25e   : > { %5191 = vmatpush3.msra.mxu1 %v1973_v41  ;;  %5203 = vmatprep.mubr.msk.f32.mxu0 %vm1219_vm1, %v6269_v13 }
 0x25f   : > { %5192 = vmatprep.subr.mxu1 %v1972_v43  ;;  %5198 = vmatprep.mubr.msk.f32.mxu1 %vm1307_vm2, %v6276_v16 }
 0x260   : > { %5202 = vmatpush3.msra.mxu0 %v2058_v42  ;;  %5193 = vmatpush3.msra.mxu1 %v1972_v43 }
 0x261   : > { %5206 = vmatprep.subr.mxu0 %v2140_v44  ;;  %5194 = vmatprep.subr.mxu1 %v1971_v45 }
 0x262   : > { %5204 = vmatmul.mubr.msk.f32.vlgmr.msra.gmra.mxu0 %vm1219_vm1, %v6267_v12  ;;  %5195 = vmatpush3.msra.mxu1 %v1971_v45 }
 0x263   : > { %5207 = vmatpush3.msra.mxu0 %v2140_v44  ;;  %5214 = vmatprep.mubr.msk.f32.mxu0 %vm1307_vm2, %v6276_v16  ;;  %v2626_v16 = vld [vmem:[#allocation8 + $0x80] sm:$0xff] }
 0x264   : > { %5208 = vmatprep.subr.mxu0 %v2139_v46  ;;  %5196 = vmatprep.subr.mxu1 %v1970_v47 }
 0x265   : > { %5209 = vmatpush3.msra.mxu0 %v2139_v46  ;;  %5197 = vmatpush3.msra.mxu1 %v1970_v47 }
 0x266   : > { %5210 = vmatprep.subr.mxu0 %v2138_v48  ;;  %5199 = vmatmul.mubr.msk.f32.vlgmr.msra.gmra.mxu1 %vm1307_vm2, %v6271_v14 }
 0x267   : > { %5211 = vmatpush3.msra.mxu0 %v2138_v48  ;;  %5217 = vmatprep.subr.mxu1 %v4783_v49 }
 0x268   : > { %5212 = vmatprep.subr.mxu0 %v2137_v50  ;;  %5218 = vmatpush3.msra.mxu1 %v4783_v49 }
 0x269   : > { %5213 = vmatpush3.msra.mxu0 %v2137_v50  ;;  %5219 = vmatprep.mubr.msk.f32.mxu1 %vm1219_vm1, %v6191_v1 }
 0x26a   : > { %5215 = vmatmul.mubr.msk.f32.vlgmr.msra.gmra.mxu0 %vm1307_vm2, %v6271_v14  ;;  %5222 = vmatprep.subr.mxu1 %v2301_v51  ;;  %v2795_v14 = vld [vmem:[#allocation11 + $0x90] sm:$0xff] }
 0x26b   : > { %5220 = vmatmul.mubr.msk.f32.vlgmr.msra.gmra.mxu1 %vm1219_vm1, %v6189_v0  ;;  %5233 = vmatprep.subr.mxu0 %v2380_v52 }
 0x26c   : > { %5223 = vmatpush3.msra.mxu1 %v2301_v51  ;;  %5234 = vmatpush3.msra.mxu0 %v2380_v52 }
 0x26d   : > { %5224 = vmatprep.subr.mxu1 %v2300_v53  ;;  %5235 = vmatprep.mubr.msk.f32.mxu0 %vm1219_vm1, %v6191_v1 }
 0x26e   : > { %5225 = vmatpush3.msra.mxu1 %v2300_v53  ;;  %5238 = vmatprep.subr.mxu0 %v2462_v54 }
 0x26f   : > { %5226 = vmatprep.subr.mxu1 %v2299_v55  ;;  %5236 = vmatmul.mubr.msk.f32.vlgmr.msra.gmra.mxu0 %vm1219_vm1, %v6189_v0 }
 0x270   : > { %5239 = vmatpush3.msra.mxu0 %v2462_v54  ;;  %5227 = vmatpush3.msra.mxu1 %v2299_v55 }
 0x271   : > { %5240 = vmatprep.subr.mxu0 %v2461_v56  ;;  %5228 = vmatprep.subr.mxu1 %v2298_v57 }
 0x272   : > { %5241 = vmatpush3.msra.mxu0 %v2461_v56  ;;  %5229 = vmatpush3.msra.mxu1 %v2298_v57 }
 0x273   : > { %5230 = vmatprep.mubr.msk.f32.mxu1 %vm1307_vm2, %v6209_v5  ;;  %5242 = vmatprep.subr.mxu0 %v2460_v58 }
 0x274   : > { %5231 = vmatmul.mubr.msk.f32.vlgmr.msra.gmra.mxu1 %vm1307_vm2, %v6202_v4  ;;  %5243 = vmatpush3.msra.mxu0 %v2460_v58 }
 0x275   : > { %5244 = vmatprep.subr.mxu0 %v2459_v59  ;;  %5249 = vmatprep.subr.mxu1 %v4792_v60 }
 0x276   : > { %5251 = vmatprep.mubr.msk.f32.mxu1 %vm1219_vm1, %v6278_v17  ;;  %5245 = vmatpush3.msra.mxu0 %v2459_v59 }
 0x277   : > { %5246 = vmatprep.mubr.msk.f32.mxu0 %vm1307_vm2, %v6209_v5  ;;  %5250 = vmatpush3.msra.mxu1 %v4792_v60 }
 0x278   : > { %5247 = vmatmul.mubr.msk.f32.vlgmr.msra.gmra.mxu0 %vm1307_vm2, %v6202_v4  ;;  %5254 = vmatprep.subr.mxu1 %v2629_v61 }
 0x279   : > { %5252 = vmatmul.mubr.msk.f32.vlgmr.msra.gmra.mxu1 %vm1219_vm1, %v6273_v15  ;;  %5265 = vmatprep.subr.mxu0 %v2714_v62 }
 0x27a   : > { %5255 = vmatpush3.msra.mxu1 %v2629_v61  ;;  %5267 = vmatprep.mubr.msk.f32.mxu0 %vm1219_vm1, %v6278_v17 }
 0x27b   : > { %5256 = vmatprep.subr.mxu1 %v2628_v63  ;;  %5262 = vmatprep.mubr.msk.f32.mxu1 %vm1307_vm2, %v6291_v21 }
 0x27c   : > { %5266 = vmatpush3.msra.mxu0 %v2714_v62  ;;  %5257 = vmatpush3.msra.mxu1 %v2628_v63 }
 0x27d   : > { %5270 = vmatprep.subr.mxu0 %v2796_v8  ;;  %5258 = vmatprep.subr.mxu1 %v2627_v9 }
 0x27e   : > { %5268 = vmatmul.mubr.msk.f32.vlgmr.msra.gmra.mxu0 %vm1219_vm1, %v6273_v15  ;;  %5259 = vmatpush3.msra.mxu1 %v2627_v9 }
 0x27f   : > { %5271 = vmatpush3.msra.mxu0 %v2796_v8  ;;  %5278 = vmatprep.mubr.msk.f32.mxu0 %vm1307_vm2, %v6291_v21  ;;  %v3130_v21 = vld [vmem:[#allocation11 + $0xb8] sm:$0xff] }
 0x280   : > { %5272 = vmatprep.subr.mxu0 %v2795_v14  ;;  %5260 = vmatprep.subr.mxu1 %v2626_v16 }
 0x281   : > { %5273 = vmatpush3.msra.mxu0 %v2795_v14  ;;  %5261 = vmatpush3.msra.mxu1 %v2626_v16 }
 0x282   : > { %5274 = vmatprep.subr.mxu0 %v2794_v18  ;;  %5263 = vmatmul.mubr.msk.f32.vlgmr.msra.gmra.mxu1 %vm1307_vm2, %v6286_v19 }
 0x283   : > { %5275 = vmatpush3.msra.mxu0 %v2794_v18  ;;  %5281 = vmatprep.subr.mxu1 %v4801_v20 }
 0x284   : > { %5276 = vmatprep.subr.mxu0 %v2793_v22  ;;  %5282 = vmatpush3.msra.mxu1 %v4801_v20 }
 0x285   : > { %5277 = vmatpush3.msra.mxu0 %v2793_v22  ;;  %5286 = vmatprep.subr.mxu1 %v2963_v23 }
 0x286   : > { %5279 = vmatmul.mubr.msk.f32.vlgmr.msra.gmra.mxu0 %vm1307_vm2, %v6286_v19  ;;  %5297 = vmatprep.subr.mxu0 %v3048_v24 }
 0x287   : > { %5298 = vmatpush3.msra.mxu0 %v3048_v24 }
 0x288   : > { %5302 = vmatprep.subr.mxu0 %v3130_v21 }
 0x2fc   : > { %v6393_v25 = vpop.f32.mrf.mxu0 }
 0x2fe   : > { %v6395_v26 = vpop.f32.mrf.mxu0 }
 0x2ff   : > { %5283 = vmatprep.mubr.msk.f32.mxu1 %vm1219_vm1, %v6395_v26  ;;  %5299 = vmatprep.mubr.msk.f32.mxu0 %vm1219_vm1, %v6395_v26 }
 0x300   : > { %5284 = vmatmul.mubr.msk.f32.vlgmr.msra.gmra.mxu1 %vm1219_vm1, %v6393_v25  ;;  %5300 = vmatmul.mubr.msk.f32.vlgmr.msra.gmra.mxu0 %vm1219_vm1, %v6393_v25  ;;  %v5125_v33 = vpop.f32.mrf.mxu0 }
 0x301   : > { %5287 = vmatpush3.msra.mxu1 %v2963_v23  ;;  %5303 = vmatpush3.msra.mxu0 %v3130_v21  ;;  %v5120_v19 = vpop.f32.mrf.mxu1  ;;  %v1302_v36 = vadd.f32 %v5125_v33, %v4755_v32  ;;  %v3242_v21 = vld [vmem:[#allocation13] sm:$0xff] }
 0x302   : > { %5288 = vmatprep.subr.mxu1 %v2962_v27  ;;  %5304 = vmatprep.subr.mxu0 %v3129_v28  ;;  %v1292_v37 = vpop.f32.mrf.mxu0 }
 0x303   : > { %5289 = vmatpush3.msra.mxu1 %v2962_v27  ;;  %5305 = vmatpush3.msra.mxu0 %v3129_v28  ;;  %v1193_v31 = vpop.f32.mrf.mxu1  ;;  %v1301_v38 = vadd.f32 %v4755_v32, %v1292_v37  ;;  %v3323_v27 = vld [vmem:[#allocation14 + $0x18] sm:$0xff]  ;;  %v3322_v28 = vld [vmem:[#allocation14 + $0x10] sm:$0xff] }
 0x304   : > { %5290 = vmatprep.subr.mxu1 %v2961_v29  ;;  %5306 = vmatprep.subr.mxu0 %v3128_v30 }
 0x305   : > { %5291 = vmatpush3.msra.mxu1 %v2961_v29  ;;  %5294 = vmatprep.mubr.msk.f32.mxu1 %vm1307_vm2, %v1193_v31  ;;  %v3320_v29 = vld [vmem:[#allocation14] sm:$0xff] }
 0x306   : > { %5307 = vmatpush3.msra.mxu0 %v3128_v30  ;;  %5310 = vmatprep.mubr.msk.f32.mxu0 %vm1307_vm2, %v1193_v31  ;;  %v5141_v30 = vpop.f32.mrf.mxu0 }
 0x307   : > { %5292 = vmatprep.subr.mxu1 %v2960_v34  ;;  %5308 = vmatprep.subr.mxu0 %v3127_v35 }
 0x308   : > { %5293 = vmatpush3.msra.mxu1 %v2960_v34  ;;  %5309 = vmatpush3.msra.mxu0 %v3127_v35  ;;  %v1458_v31 = vpop.f32.mrf.mxu0 }
 0x309   : > { %5295 = vmatmul.mubr.msk.f32.vlgmr.msra.gmra.mxu1 %vm1307_vm2, %v5120_v19  ;;  %5311 = vmatmul.mubr.msk.f32.vlgmr.msra.gmra.mxu0 %vm1307_vm2, %v5120_v19  ;;  %v3321_v19 = vld [vmem:[#allocation14 + $0x8] sm:$0xff] }
 0x30a   : > { %v5136_v39 = vpop.f32.mrf.mxu1  ;;  %5315 = vmatprep.mubr.msk.f32.mxu1 %vm1219_vm1, %v6191_v1  ;;  %5333 = vmatprep.mubr.msk.f32.mxu0 %vm589_vm0, %v6193_v2 }
 0x30b   : > { %v1390_v40 = vadd.f32 %v5136_v39, %v1302_v36  ;;  %5313 = vmatprep.subr.mxu1 %v3242_v21 }
 0x30c   : > { %v1380_v41 = vpop.f32.mrf.mxu1  ;;  %5314 = vmatpush3.msra.mxu1 %v3242_v21 }
 0x30d   : > { %v1389_v42 = vadd.f32 %v1380_v41, %v1301_v38  ;;  %5318 = vmatprep.subr.mxu1 %v3323_v27  ;;  %5316 = vmatmul.mubr.msk.f32.vlgmr.msra.gmra.mxu1 %vm1219_vm1, %v6189_v0 }
 0x30e   : > { %5319 = vmatpush3.msra.mxu1 %v3323_v27  ;;  %v5152_v32 = vpop.f32.mrf.mxu0 }
 0x30f   : > { %v5157_v43 = vpop.f32.mrf.mxu1  ;;  %5320 = vmatprep.subr.mxu1 %v3322_v28 }
 0x310   : > { %v1634_v44 = vadd.f32 %v5157_v43, %v1390_v40  ;;  %5321 = vmatpush3.msra.mxu1 %v3322_v28  ;;  %v1539_v33 = vpop.f32.mrf.mxu0 }
 0x311   : > { %v1624_v45 = vpop.f32.mrf.mxu1  ;;  %5322 = vmatprep.subr.mxu1 %v3321_v19 }
 0x312   : > { %v1633_v46 = vadd.f32 %v1624_v45, %v1389_v42  ;;  %5323 = vmatpush3.msra.mxu1 %v3321_v19  ;;  %v6418_v42 = vld [vmem:[#allocation14 + $0x38] sm:$0xff] }
 0x313   : > { %5324 = vmatprep.subr.mxu1 %v3320_v29 }
 0x314   : > { %5325 = vmatpush3.msra.mxu1 %v3320_v29  ;;  %v5173_v34 = vpop.f32.mrf.mxu0 }
 0x315   : > { %5341 = vmatprep.subr.mxu1 %v6418_v42 }
 0x316   : > { %v1791_v35 = vpop.f32.mrf.mxu0 }
 0x318   : > { %v5168_v47 = vpop.f32.mrf.mxu1 }
 0x319   : > { %v1722_v48 = vadd.f32 %v5168_v47, %v1634_v44  ;;  %v4756_v44 = vld [vmem:[%s6579_s11] ss:$0 sm:$0xff] }
 0x31a   : > { %v1712_v49 = vpop.f32.mrf.mxu1  ;;  %v1468_v47 = vadd.f32 %v5141_v30, %v4756_v44 }
 0x31b   : > { %v1721_v50 = vadd.f32 %v1712_v49, %v1633_v46 }
 0x31c   : > { %v5184_v36 = vpop.f32.mrf.mxu0 }
 0x31d   : > { %v5189_v51 = vpop.f32.mrf.mxu1 }
 0x31e   : > { %v1968_v52 = vadd.f32 %v5189_v51, %v1722_v48  ;;  %v1873_v37 = vpop.f32.mrf.mxu0  ;;  %v1467_v48 = vadd.f32 %v4756_v44, %v1458_v31 }
 0x31f   : > { %v1958_v53 = vpop.f32.mrf.mxu1 }
 0x320   : > { %v1967_v54 = vadd.f32 %v1958_v53, %v1721_v50  ;;  %v1549_v50 = vadd.f32 %v5152_v32, %v1468_v47  ;;  %v1548_v51 = vadd.f32 %v1539_v33, %v1467_v48 }
 0x322   : > { %v5205_v38 = vpop.f32.mrf.mxu0  ;;  %v1801_v53 = vadd.f32 %v5173_v34, %v1549_v50 }
 0x324   : > { %v2125_v39 = vpop.f32.mrf.mxu0 }
 0x326   : > { %v5200_v55 = vpop.f32.mrf.mxu1 }
 0x327   : > { %v2056_v56 = vadd.f32 %v5200_v55, %v1968_v52  ;;  %v1883_v55 = vadd.f32 %v5184_v36, %v1801_v53  ;;  %v3807_v53 = vld [vmem:[#allocation14 + $0x58] sm:$0xff] }
 0x328   : > { %v2046_v57 = vpop.f32.mrf.mxu1 }
 0x329   : > { %v2055_v58 = vadd.f32 %v2046_v57, %v1967_v54  ;;  %v1800_v54 = vadd.f32 %v1791_v35, %v1548_v51  ;;  %v3483_v51 = vld [vmem:[#allocation13 + $0x8] sm:$0xff] }
 0x32a   : > { %v5216_v40 = vpop.f32.mrf.mxu0 }
 0x32b   : > { %v5221_v59 = vpop.f32.mrf.mxu1  ;;  %v1882_v57 = vadd.f32 %v1873_v37, %v1800_v54 }
 0x32c   : > { %v2296_v60 = vadd.f32 %v5221_v59, %v2056_v56  ;;  %v2207_v41 = vpop.f32.mrf.mxu0 }
 0x32d   : > { %v2286_v61 = vpop.f32.mrf.mxu1 }
 0x32e   : > { %v2295_v62 = vadd.f32 %v2286_v61, %v2055_v58  ;;  %v2135_v58 = vadd.f32 %v5205_v38, %v1883_v55 }
 0x32f   : > { %v5237_v43 = vpop.f32.mrf.mxu0 }
 0x330   : > { %v2217_v61 = vadd.f32 %v5216_v40, %v2135_v58 }
 0x331   : > { %v2447_v45 = vpop.f32.mrf.mxu0 }
 0x334   : > { %v5232_v63 = vpop.f32.mrf.mxu1 }
 0x335   : > { %v2378_v8 = vadd.f32 %v5232_v63, %v2296_v60  ;;  %v2134_v60 = vadd.f32 %v2125_v39, %v1882_v57 }
 0x336   : > { %v2368_v9 = vpop.f32.mrf.mxu1 }
 0x337   : > { %v2377_v14 = vadd.f32 %v2368_v9, %v2295_v62  ;;  %v2216_v63 = vadd.f32 %v2207_v41, %v2134_v60 }
 0x338   : > { %v5248_v46 = vpop.f32.mrf.mxu0 }
 0x339   : > { %v5253_v16 = vpop.f32.mrf.mxu1 }
 0x33a   : > { %v2624_v18 = vadd.f32 %v5253_v16, %v2378_v8  ;;  %v2529_v49 = vpop.f32.mrf.mxu0  ;;  %v2457_v8 = vadd.f32 %v5237_v43, %v2217_v61  ;;  %v3725_v61 = vld [vmem:[#allocation13 + $0x10] sm:$0xff] }
 0x33b   : > { %v2614_v20 = vpop.f32.mrf.mxu1 }
 0x33c   : > { %v2623_v22 = vadd.f32 %v2614_v20, %v2377_v14  ;;  %v2456_v20 = vadd.f32 %v2447_v45, %v2216_v63  ;;  %v3805_v63 = vld [vmem:[#allocation14 + $0x48] sm:$0xff] }
 0x33e   : > { %v5269_v52 = vpop.f32.mrf.mxu0  ;;  %v2538_v19 = vadd.f32 %v2529_v49, %v2456_v20 }
 0x340   : > { %v2781_v56 = vpop.f32.mrf.mxu0 }
 0x341   : > { %v2790_v30 = vadd.f32 %v2781_v56, %v2538_v19  ;;  %v4209_v19 = vld [vmem:[#allocation14 + $0x90] sm:$0xff] }
 0x342   : > { %v5264_v23 = vpop.f32.mrf.mxu1 }
 0x343   : > { %v2712_v24 = vadd.f32 %v5264_v23, %v2624_v18  ;;  %v2539_v23 = vadd.f32 %v5248_v46, %v2457_v8  ;;  %v3804_v8 = vld [vmem:[#allocation14 + $0x40] sm:$0xff] }
 0x344   : > { %v2702_v62 = vpop.f32.mrf.mxu1 }
 0x345   : > { %v2711_v14 = vadd.f32 %v2702_v62, %v2623_v22  ;;  %v2791_v29 = vadd.f32 %v5269_v52, %v2539_v23  ;;  %v3562_v52 = vld [vmem:[#allocation14 + $0x20] sm:$0xff] }
 0x346   : > { %v5280_v59 = vpop.f32.mrf.mxu0 }
 0x347   : > { %v2873_v31 = vadd.f32 %v5280_v59, %v2791_v29  ;;  %v3806_v59 = vld [vmem:[#allocation14 + $0x50] sm:$0xff]  ;;  %v4208_v29 = vld [vmem:[#allocation14 + $0x88] sm:$0xff] }
 0x348   : > { %v2863_v16 = vpop.f32.mrf.mxu0 }
 0x349   : > { %v2872_v33 = vadd.f32 %v2863_v16, %v2790_v30  ;;  %v4207_v30 = vld [vmem:[#allocation14 + $0x80] sm:$0xff] }
 0x3c0   : > { %v5285_v9 = vpop.f32.mrf.mxu1  ;;  %v5301_v27 = vpop.f32.mrf.mxu0 }
 0x3c1   : > { %v2958_v18 = vadd.f32 %v5285_v9, %v2712_v24  ;;  %v3125_v34 = vadd.f32 %v5301_v27, %v2873_v31  ;;  %v3892_v9 = vld [vmem:[#allocation13 + $0x18] sm:$0xff]  ;;  %v4210_v27 = vld [vmem:[#allocation14 + $0x98] sm:$0xff] }
 0x3c2   : > { %v2948_v21 = vpop.f32.mrf.mxu1  ;;  %v3115_v32 = vpop.f32.mrf.mxu0 }
 0x3c3   : > { %v6424_v28 = vadd.f32 %v2948_v21, %v2711_v14  ;;  %v3124_v37 = vadd.f32 %v3115_v32, %v2872_v33  ;;  %v3974_v14 = vld [vmem:[#allocation14 + $0x78] sm:$0xff]  ;;  %v4128_v21 = vld [vmem:[#allocation13 + $0x20] sm:$0xff] }
 0x3c9   : > { %v5296_v35 = vpop.f32.mrf.mxu1  ;;  %v5312_v36 = vpop.f32.mrf.mxu0 }
 0x3ca   : > { %v6426_v38 = vadd.f32 %v5296_v35, %v2958_v18  ;;  %v3207_v22 = vadd.f32 %v5312_v36, %v3125_v34 }
 0x3cb   : > { %v3197_v24 = vpop.f32.mrf.mxu0 }
 0x3cc   : > { %v4813_v39 = vmul.f32 -1.442695, %v3207_v22  ;;  %v3206_v40 = vadd.f32 %v3197_v24, %v3124_v37 }
 0x3ce   : > { %v4812_v41 = vmul.f32 -1.442695, %v3206_v40  ;;  %5558 = vpow2.f32 %v4813_v39  ;;  %v4370_v40 = vld [vmem:[#allocation13 + $0x28] sm:$0xff] }
 0x3d0   : > { %5560 = vpow2.f32 %v4812_v41 }
 0x3db   : > { %v5559_v43 = vpop.eup %5558 }
 0x3dc   : > { %v3227_v44 = vadd.f32 1.0, %v5559_v43 }
 0x3dd   : > { %v5561_v45 = vpop.eup %5560 }
 0x3de   : > { %5562 = vrcp.f32 %v3227_v44  ;;  %v3226_v46 = vadd.f32 1.0, %v5561_v45  ;;  %v5578_v45 = vld [vmem:[#allocation7 + $0x8] sm:$0xff] }
 0x3e0   : > { %5564 = vrcp.f32 %v3226_v46  ;;  %v4451_v46 = vld [vmem:[#allocation14 + $0xb0] sm:$0xff] }
 0x3eb   : > { %v5563_v47 = vpop.eup %5562 }
 0x3ec   : > { %v6429_v48 = vmul.f32 %v5563_v47, %v6202_v4  ;;  %v3564_v4 = vld [vmem:[#allocation14 + $0x30] sm:$0xff]  ;;  %v4450_v47 = vld [vmem:[#allocation14 + $0xa8] sm:$0xff] }
 0x3ed   : > { %v5565_v49 = vpop.eup %5564 }
 0x3ee   : > { %5329 = vmatprep.subr.mxu0 %v6429_v48  ;;  %v6433_v50 = vmul.f32 %v5565_v49, %v6209_v5  ;;  %v3563_v5 = vld [vmem:[#allocation14 + $0x28] sm:$0xff] }
 0x3ef   : > { %5330 = vmatpush3.msra.mxu0 %v6429_v48 }
 0x3f0   : > { %5326 = vmatprep.mubr.msk.f32.mxu1 %vm1307_vm2, %v6433_v50  ;;  %5331 = vmatprep.subr.mxu0 %v6433_v50 }
 0x3f1   : > { %5327 = vmatmul.mubr.msk.f32.vlgmr.msra.gmra.mxu1 %vm1307_vm2, %v6429_v48  ;;  %5332 = vmatpush3.msra.mxu0 %v6433_v50 }
 0x3f2   : > { %5334 = vmatmul.mubr.msk.f32.vlgmr.msra.gmra.mxu0 %vm589_vm0, %v6199_v3  ;;  %5336 = vmatprep.subr.mxu0 %v3483_v51 }
 0x3f3   : > { %5338 = vmatprep.mubr.msk.f32.mxu0 %vm1219_vm1, %v6226_v7  ;;  %5337 = vmatpush3.msra.mxu0 %v3483_v51  ;;  %v6451_v7 = vpop.f32.mrf.mxu1 }
 0x3f4   : > { %5342 = vmatpush3.msra.mxu1 %v6418_v42  ;;  %v6456_v42 = vld [vmem:[%s6580_s12] ss:$0 sm:$0xff] }
 0x3f5   : > { %5343 = vmatprep.subr.mxu1 %v3564_v4  ;;  %v5317_v54 = vpop.f32.mrf.mxu1 }
 0x3f6   : > { %5339 = vmatmul.mubr.msk.f32.vlgmr.msra.gmra.mxu0 %vm1219_vm1, %v6223_v6  ;;  %5344 = vmatpush3.msra.mxu1 %v3564_v4  ;;  %v4811_v4 = vmul.f32 -1.442695, %v6426_v38 }
 0x3f7   : > { %5356 = vmatprep.mubr.msk.f32.mxu0 %vm589_vm0, %v6193_v2  ;;  %5345 = vmatprep.subr.mxu1 %v3563_v5  ;;  %v6458_v6 = vpop.f32.mrf.mxu1  ;;  %v3319_v2 = vadd.f32 %v5317_v54, %v6456_v42 }
 0x3f8   : > { %5346 = vmatpush3.msra.mxu1 %v3563_v5  ;;  %5566 = vpow2.f32 %v4811_v4 }
 0x3f9   : > { %5347 = vmatprep.subr.mxu1 %v3562_v52 }
 0x3fa   : > { %5348 = vmatpush3.msra.mxu1 %v3562_v52 }
 0x3fb   : > { %5364 = vmatprep.subr.mxu1 %v3807_v53 }
 0x4b1   : > { %v5328_v55 = vpop.f32.mrf.mxu1 }
 0x4b2   : > { %v3406_v56 = vadd.f32 %v5328_v55, %v3319_v2  ;;  %v5335_v57 = vpop.f32.mrf.mxu0 }
 0x4b3   : > { %5352 = vmatprep.subr.mxu0 %v5335_v57 }
 0x4b4   : > { %v3473_v58 = vpop.f32.mrf.mxu0  ;;  %5353 = vmatpush3.msra.mxu0 %v5335_v57 }
 0x4b5   : > { %5349 = vmatprep.mubr.msk.f32.mxu1 %vm1307_vm2, %v3473_v58  ;;  %5354 = vmatprep.subr.mxu0 %v3473_v58 }
 0x4b6   : > { %v5340_v60 = vpop.f32.mrf.mxu0  ;;  %5350 = vmatmul.mubr.msk.f32.vlgmr.msra.gmra.mxu1 %vm1307_vm2, %v5335_v57  ;;  %5355 = vmatpush3.msra.mxu0 %v3473_v58  ;;  %v5567_v58 = vpop.eup %5566 }
 0x4b7   : > { %v3560_v62 = vadd.f32 %v5340_v60, %v3406_v56  ;;  %5365 = vmatpush3.msra.mxu1 %v3807_v53  ;;  %5357 = vmatmul.mubr.msk.f32.vlgmr.msra.gmra.mxu0 %vm589_vm0, %v6199_v3  ;;  %v3973_v3 = vld [vmem:[#allocation14 + $0x70] sm:$0xff]  ;;  %v3215_v38 = vadd.f32 1.0, %v5567_v58 }
 0x4b8   : > { %5366 = vmatprep.subr.mxu1 %v3806_v59  ;;  %5361 = vmatprep.mubr.msk.f32.mxu0 %vm1219_vm1, %v6269_v13  ;;  %v3971_v13 = vld [vmem:[#allocation14 + $0x60] sm:$0xff]  ;;  %v6480_v16 = vpop.f32.mrf.mxu0 }
 0x4b9   : > { %5367 = vmatpush3.msra.mxu1 %v3806_v59  ;;  %5359 = vmatprep.subr.mxu0 %v3725_v61 }
 0x4ba   : > { %5368 = vmatprep.subr.mxu1 %v3805_v63  ;;  %5360 = vmatpush3.msra.mxu0 %v3725_v61 }
 0x4bb   : > { %5369 = vmatpush3.msra.mxu1 %v3805_v63  ;;  %5362 = vmatmul.mubr.msk.f32.vlgmr.msra.gmra.mxu0 %vm1219_vm1, %v6267_v12  ;;  %v3972_v12 = vld [vmem:[#allocation14 + $0x68] sm:$0xff] }
 0x4bc   : > { %5370 = vmatprep.subr.mxu1 %v3804_v8  ;;  %5375 = vmatprep.subr.mxu0 %v3892_v9 }
 0x4bd   : > { %5371 = vmatpush3.msra.mxu1 %v3804_v8  ;;  %5376 = vmatpush3.msra.mxu0 %v3892_v9 }
 0x4be   : > { %5391 = vmatprep.subr.mxu1 %v6429_v48  ;;  %5377 = vmatprep.mubr.msk.f32.mxu0 %vm1219_vm1, %v6191_v1  ;;  %v6478_v1 = vpop.f32.mrf.mxu1 }
 0x4bf   : > { %5380 = vmatprep.subr.mxu0 %v3974_v14  ;;  %5378 = vmatmul.mubr.msk.f32.vlgmr.msra.gmra.mxu0 %vm1219_vm1, %v6189_v0 }
 0x4c0   : > { %5381 = vmatpush3.msra.mxu0 %v3974_v14  ;;  %5388 = vmatprep.mubr.msk.f32.mxu0 %vm1307_vm2, %v6433_v50 }
 0x4c1   : > { %5382 = vmatprep.subr.mxu0 %v3973_v3 }
 0x4c2   : > { %5383 = vmatpush3.msra.mxu0 %v3973_v3 }
 0x4c3   : > { %5384 = vmatprep.subr.mxu0 %v3972_v12 }
 0x4c4   : > { %5385 = vmatpush3.msra.mxu0 %v3972_v12 }
 0x4c5   : > { %5386 = vmatprep.subr.mxu0 %v3971_v13 }
 0x4c6   : > { %5387 = vmatpush3.msra.mxu0 %v3971_v13 }
 0x4c7   : > { %5389 = vmatmul.mubr.msk.f32.vlgmr.msra.gmra.mxu0 %vm1307_vm2, %v6429_v48  ;;  %5403 = vmatprep.subr.mxu0 %v4210_v27 }
 0x4c8   : > { %5404 = vmatpush3.msra.mxu0 %v4210_v27 }
 0x4c9   : > { %5405 = vmatprep.subr.mxu0 %v4209_v19 }
 0x4ca   : > { %5406 = vmatpush3.msra.mxu0 %v4209_v19 }
 0x4cb   : > { %5407 = vmatprep.subr.mxu0 %v4208_v29 }
 0x4cc   : > { %5408 = vmatpush3.msra.mxu0 %v4208_v29 }
 0x4cd   : > { %5409 = vmatprep.subr.mxu0 %v4207_v30 }
 0x4ce   : > { %5410 = vmatpush3.msra.mxu0 %v4207_v30 }
 0x576   : > { %v5351_v0 = vpop.f32.mrf.mxu1 }
 0x577   : > { %v3648_v18 = vadd.f32 %v5351_v0, %v3560_v62  ;;  %v5358_v20 = vpop.f32.mrf.mxu0 }
 0x579   : > { %v3715_v23 = vpop.f32.mrf.mxu0 }
 0x57a   : > { %5372 = vmatprep.mubr.msk.f32.mxu1 %vm1307_vm2, %v3715_v23  ;;  %v5579_v23 = vld [vmem:[%s6162_s18 + $0x8] sm:$0xff] }
 0x57b   : > { %5373 = vmatmul.mubr.msk.f32.vlgmr.msra.gmra.mxu1 %vm1307_vm2, %v5358_v20 }
 0x57c   : > { %5392 = vmatpush3.msra.mxu1 %v6429_v48  ;;  %5395 = vmatprep.mubr.msk.f32.mxu1 %vm589_vm0, %v6240_v10  ;;  %v4449_v48 = vld [vmem:[#allocation14 + $0xa0] sm:$0xff] }
 0x57d   : > { %5393 = vmatprep.subr.mxu1 %v6433_v50 }
 0x57e   : > { %5394 = vmatpush3.msra.mxu1 %v6433_v50 }
 0x57f   : > { %5396 = vmatmul.mubr.msk.f32.vlgmr.msra.gmra.mxu1 %vm589_vm0, %v6244_v11  ;;  %5398 = vmatprep.subr.mxu1 %v4128_v21  ;;  %v4452_v11 = vld [vmem:[#allocation14 + $0xb8] sm:$0xff] }
 0x580   : > { %5400 = vmatprep.mubr.msk.f32.mxu1 %vm1219_vm1, %v6278_v17  ;;  %5399 = vmatpush3.msra.mxu1 %v4128_v21  ;;  %v5363_v17 = vpop.f32.mrf.mxu0 }
 0x581   : > { %5426 = vmatprep.subr.mxu0 %v4452_v11  ;;  %v3802_v33 = vadd.f32 %v5363_v17, %v3648_v18 }
 0x582   : > { %v3792_v31 = vpop.f32.mrf.mxu0 }
 0x583   : > { %5401 = vmatmul.mubr.msk.f32.vlgmr.msra.gmra.mxu1 %vm1219_vm1, %v6273_v15  ;;  %v3638_v15 = vpop.f32.mrf.mxu1 }
 0x584   : > { %5418 = vmatprep.mubr.msk.f32.mxu1 %vm589_vm0, %v6240_v10  ;;  %v5379_v32 = vpop.f32.mrf.mxu0 }
 0x586   : > { %v3959_v35 = vpop.f32.mrf.mxu0 }
 0x588   : > { %v5390_v24 = vpop.f32.mrf.mxu0 }
 0x58a   : > { %v4041_v56 = vpop.f32.mrf.mxu0 }
 0x63b   : > { %v5374_v10 = vpop.f32.mrf.mxu1 }
 0x63c   : > { %v3890_v34 = vadd.f32 %v5374_v10, %v3802_v33 }
 0x63d   : > { %v3880_v36 = vpop.f32.mrf.mxu1 }
 0x63e   : > { %v3969_v37 = vadd.f32 %v5379_v32, %v3890_v34 }
 0x63f   : > { %v5397_v22 = vpop.f32.mrf.mxu1 }
 0x640   : > { %5414 = vmatprep.subr.mxu1 %v5397_v22  ;;  %v4051_v41 = vadd.f32 %v5390_v24, %v3969_v37 }
 0x641   : > { %v4118_v39 = vpop.f32.mrf.mxu1  ;;  %5415 = vmatpush3.msra.mxu1 %v5397_v22 }
 0x642   : > { %5411 = vmatprep.mubr.msk.f32.mxu0 %vm1307_vm2, %v4118_v39  ;;  %5416 = vmatprep.subr.mxu1 %v4118_v39 }
 0x643   : > { %v5402_v43 = vpop.f32.mrf.mxu1  ;;  %5412 = vmatmul.mubr.msk.f32.vlgmr.msra.gmra.mxu0 %vm1307_vm2, %v5397_v22  ;;  %5417 = vmatpush3.msra.mxu1 %v4118_v39 }
 0x644   : > { %v4205_v44 = vadd.f32 %v5402_v43, %v4051_v41  ;;  %5419 = vmatmul.mubr.msk.f32.vlgmr.msra.gmra.mxu1 %vm589_vm0, %v5578_v45  ;;  %5421 = vmatprep.subr.mxu1 %v4370_v40 }
 0x645   : > { %5423 = vmatprep.mubr.msk.f32.mxu1 %vm1219_vm1, %v6395_v26  ;;  %5422 = vmatpush3.msra.mxu1 %v4370_v40  ;;  %v4195_v49 = vpop.f32.mrf.mxu1  ;;  %v3045_v26 = vadd.f32 %v6451_v7, %v6424_v28 }
 0x646   : > { %5427 = vmatpush3.msra.mxu0 %v4452_v11  ;;  %v5580_v11 = vld [vmem:[%s6162_s18] sm:$0xff]  ;;  %s5883_s18 = smov [#allocation16]  }
 0x647   : > { %5428 = vmatprep.subr.mxu0 %v4451_v46  ;;  %v4810_v5 = vmul.f32 -1.442695, %v3045_v26  ;;  %s5795_s24 = sshll.u32 %s5883_s18, 4  ;;  %s5796_s24 = int_to_ptr.vmem [resolvable:$false] %s5795_s24 }
 0x648   : > { %5424 = vmatmul.mubr.msk.f32.vlgmr.msra.gmra.mxu1 %vm1219_vm1, %v6393_v25  ;;  %5429 = vmatpush3.msra.mxu0 %v4451_v46  ;;  %v3318_v25 = vadd.f32 %v6456_v42, %v6458_v6  ;;  %s5797_s30 = scalar_lea.vmem %s5796_s24, 512  ;;  %p5798_p3 = scmp.lt.s32.totalorder %s6523_s6, %s5796_s24 }
 0x649   : > { %5430 = vmatprep.subr.mxu0 %v4450_v47  ;;  %5568 = vpow2.f32 %v4810_v5  ;;  %p5799_p4 = scmp.lt.s32.totalorder %s5797_s30, %s5791_s9 }
 0x64a   : > { %5431 = vmatpush3.msra.mxu0 %v4450_v47  ;;  %v3405_v52 = vadd.f32 %v6478_v1, %v3318_v25  ;;  %5570 = vrcp.f32 %v3215_v38 }
 0x64b   : > { %5432 = vmatprep.subr.mxu0 %v4449_v48  ;;  %p5800_p8 = por %p5799_p4, %p5798_p3 }
 0x64c   : > { %5433 = vmatpush3.msra.mxu0 %v4449_v48  ;;  %v3559_v53 = vadd.f32 %v6480_v16, %v3405_v52 }
 0x64d   : > { %p5801_p6 = pnand %p5800_p8, %p5794_p1 }
 0x64e   : > { %v3647_v54 = vadd.f32 %v3638_v15, %v3559_v53 }
 0x650   : > { %v3801_v2 = vadd.f32 %v3792_v31, %v3647_v54 }
 0x652   : > { %v3889_v55 = vadd.f32 %v3880_v36, %v3801_v2 }
 0x654   : > { %v3968_v57 = vadd.f32 %v3959_v35, %v3889_v55 }
 0x656   : > { %v5569_v28 = vpop.eup %5568  ;;  %v4050_v60 = vadd.f32 %v4041_v56, %v3968_v57 }
 0x657   : > { %v3214_v42 = vadd.f32 1.0, %v5569_v28  ;;  %v5571_v16 = vpop.eup %5570 }
 0x658   : > { %v4204_v6 = vadd.f32 %v4195_v49, %v4050_v60  ;;  %v4541_v18 = vsub.f32 1.0, %v5571_v16  ;;  %v4539_v21 = vmul.f32 %v5579_v23, %v5571_v16 }
 0x659   : > { %5572 = vrcp.f32 %v3214_v42 }
 0x666   : > { %v5573_v0 = vpop.eup %5572 }
 0x667   : > { %v4540_v19 = vsub.f32 1.0, %v5573_v0  ;;  %v4538_v17 = vmul.f32 %v5580_v11, %v5573_v0 }
 0x703   : > { %v5413_v59 = vpop.f32.mrf.mxu0 }
 0x704   : > { %v5420_v50 = vpop.f32.mrf.mxu1  ;;  %v4293_v62 = vadd.f32 %v5413_v59, %v4205_v44 }
 0x705   : > { %v4283_v61 = vpop.f32.mrf.mxu0 }
 0x706   : > { %v4360_v51 = vpop.f32.mrf.mxu1  ;;  %v4292_v8 = vadd.f32 %v4283_v61, %v4204_v6 }
 0x707   : > { %5434 = vmatprep.mubr.msk.f32.mxu0 %vm1307_vm2, %v4360_v51 }
 0x708   : > { %5435 = vmatmul.mubr.msk.f32.vlgmr.msra.gmra.mxu0 %vm1307_vm2, %v5420_v50  ;;  %v5425_v7 = vpop.f32.mrf.mxu1 }
 0x709   : > { %v4447_v9 = vadd.f32 %v5425_v7, %v4293_v62 }
 0x70a   : > { %v4437_v63 = vpop.f32.mrf.mxu1 }
 0x70b   : > { %v4446_v3 = vadd.f32 %v4437_v63, %v4292_v8 }
 0x7c8   : > { %v5436_v14 = vpop.f32.mrf.mxu0 }
 0x7c9   : > { %v4535_v12 = vadd.f32 %v5436_v14, %v4447_v9 }
 0x7ca   : > { %v4525_v13 = vpop.f32.mrf.mxu0 }
 0x7cb   : > { %5574 = vtanh.f32 %v4535_v12  ;;  %v4534_v1 = vadd.f32 %v4525_v13, %v4446_v3 }
 0x7cd   : > { %5576 = vtanh.f32 %v4534_v1 }
 0x7d8   : > { %v5575_v20 = vpop.eup %5574 }
 0x7d9   : > { %v4543_v27 = vmul.f32 %v5575_v20, %v4541_v18 }
 0x7da   : > { %v5577_v29 = vpop.eup %5576 }
 0x7db   : > { %v4545_v30 = vadd.f32 %v4543_v27, %v4539_v21  ;;  %v4542_v31 = vmul.f32 %v5577_v29, %v4540_v19 }
 0x7dd   : > { %v4544_v15 = vadd.f32 %v4542_v31, %v4538_v17  ;;  %4547 = vst.msk [vmem:[%s575_s5 + $0x8] sm:$0xff] %vm1307_vm2, %v4545_v30 }
 0x7df   : > { %4546 = vst.msk [vmem:[%s575_s5] sm:$0xff] %vm1307_vm2, %v4544_v15 }
 0x7e0   : > { %5804 = shalt.err (!%p5801_p6)
}
 0x7e1   : > { %s5805_s19 = scalar_lea.hbm %s6521_s2, 256  ;;  %s5809_s22 = scalar_lea.hbm %s6581_s13, 512 }
 0x7e2   : > { %p5806_p11 = scmp.ne.s32.totalorder %s6521_s2, %s5805_s19  ;;  %p5810_p2 = scmp.lt.s32.totalorder %s6521_s2, %s6581_s13 }
 0x7e3   : > { %p5811_p5 = scmp.lt.s32.totalorder %s5809_s22, %s5805_s19 }
 0x7e4   : > { %p5807_p7 = pnand %p5806_p11, %p6621_p12 }
 0x7e5   : > { %p5812_p10 = por %p5811_p5, %p5810_p2 }
 0x7e6   : > { %p5808_p0 = pneg %p5807_p7 }
 0x7e8   : > { %p5813_p9 = pnand %p5812_p10, %p5808_p0 }
 0x7ea   : > { %5816 = shalt.err (!%p5813_p9)
}
 0x7eb   : > { %s5884_s15 = smov 128   ;;  %s5885_s23 = smov 8  }
 0x7ec   : > { %5467 = dma.vmem_to_hbm [thread:$0]  (%p6621_p12), %s6523_s6, 256, %s6521_s2, %s4549_s14, %s5884_s15, %s5884_s15, %s5885_s23  }
 0x7ed PF: > { %s4577_s9 = sand.u32 1, %s5859_s25   ;;  %p6622_p13 = scmp.ne.s32.totalorder %s6607_s17, 0 }
 0x7ee   : > { %p6623_p1 = scmp.ge.s32.totalorder %s5871_s28, 2  ;;  %s4578_s18 = scalar_lea.sflag [#allocation4], %s4577_s9 }
 0x7f0   : > { %p5496_p3 = pnand %p6623_p1, %p6622_p13 }
 0x7f2   : > { %p5497_p4 = pneg %p5496_p3 }
 0x7f4   : > { %5854 = dma.done.wait (%p5497_p4), %s4578_s18, 256  }
 0x7f5   : > { %5856 = vsyncadd (%p5497_p4), %s4578_s18, 4294967040  ;;  %p30_p8 = scmp.ge.s32.totalorder %s6087_s21, 4   ;;  %s6624_s25 = smov %s5863_s26 }
 0x7f6   : > { %s6625_s26 = smov %s5867_s27  ;;  %s6626_s27 = smov %s6099_s20 }
 0x7f7   : > { %s6627_s28 = smov %s6087_s21  ;;  %32 = sbr.rel (!%p30_p8) target bundleno = 17 (0x11), region = 178 }
 0x7fc   :  { %4583 = vsyncpa [#allocation3], 1 }
 0x7fd   :  { %4585 = vsyncpa [#allocation3 + $0x1], 1 }
 0x7fe   :  { %4586 = vsyncpa [#allocation6], 1 }
 0x7ff   :  { %4587 = vsyncpa [#allocation9], 1 }
 0x800   :  { %4588 = vsyncpa [#allocation12], 1 }
 0x801   :  { %4589 = vsyncpa [#allocation15], 1 }
 0x802   :  { %4590 = vsyncpa [#allocation4], 1 }
 0x803   :  { %4592 = vsyncpa [#allocation4 + $0x1], 1 }

</bundles_post_ra>
